<compile_context>
chip_gen: v5e
topology: v5e:2x2
jax: 0.10.0
libtpu: 0.0.40
codegen_flags: <defaults>
</compile_context>

<pallas_src>
import functools

import jax
import jax.numpy as jnp
from jax.experimental import pallas as pl
from jax.experimental.pallas import tpu as pltpu


# ----------------------------------------------------------------------------
# Fused forward kernel.
# PyTorch GRU gate equations (gate order r, z, n):
#   r = sigmoid(Wir x + bir + Whr h + bhr)
#   z = sigmoid(Wiz x + biz + Whz h + bhz)
#   n = tanh   (Win x + bin + r * (Whn h + bhn))
#   h' = (1 - z) * n + z * h
# With bhr/bhz folded into the hoisted input-projection bias (exactly equivalent).
# ----------------------------------------------------------------------------
def _generator_kernel(num_layers, x_ref, h0_ref, *refs):
    n_layer_refs = 4 * num_layers
    layer_refs = [refs[4 * l: 4 * l + 4] for l in range(num_layers)]
    wout_ref = refs[n_layer_refs]
    bout_ref = refs[n_layer_refs + 1]
    out_ref = refs[n_layer_refs + 2]
    hid_ref = refs[n_layer_refs + 3]
    gx_scr = refs[n_layer_refs + 4]      # (S, bb, 3H) f32, time-major, reused per layer
    seq_scr = refs[n_layer_refs + 5]     # (S, bb,  H) f32, time-major, reused per layer

    bb, S, in_dim = x_ref.shape
    H = h0_ref.shape[-1]
    H3 = gx_scr.shape[-1]

    for l in range(num_layers):
        wih_ref, whh_ref, bi_ref, bhn_ref = layer_refs[l]
        wdt = wih_ref.dtype                              # bf16 weights, f32 accumulation

        # ---- time-major input rows (row index = t * bb + b) ----
        if l == 0:
            seq_tm = x_ref[...].transpose(1, 0, 2).reshape(S * bb, in_dim)
        else:
            seq_tm = seq_scr[...].reshape(S * bb, H)     # previous layer's outputs

        # ---- fused hoisted input projection: ONE (S*bb, In)@(In, 3H) MXU matmul ----
        # bi_ref already contains bih_r+bhh_r | bih_z+bhh_z | bih_n.
        gx = jnp.dot(seq_tm.astype(wdt), wih_ref[...],
                     preferred_element_type=jnp.float32) + bi_ref[...]
        gx_scr[...] = gx.reshape(S, bb, H3)

        whh = whh_ref[...]                               # (H, 3H), loaded once per layer
        bhn = bhn_ref[...]                               # (1, H),  f32

        h = h0_ref[l].astype(jnp.float32)                # (bb, H) f32 state
        # Serial recurrence, fully unrolled (S is small & static); only h is carried.
        for t in range(S):
            # ONE fused recurrent matmul per step: (bb, H) @ (H, 3H).
            gh = jnp.dot(h.astype(wdt), whh, preferred_element_type=jnp.float32)
            gxt = gx_scr[t]                              # contiguous (bb, 3H) load
            rz = jax.nn.sigmoid(gxt[:, :2 * H] + gh[:, :2 * H])   # r|z in one EUP slab
            r = rz[:, :H]
            z = rz[:, H:]
            n = jnp.tanh(gxt[:, 2 * H:] + r * (gh[:, 2 * H:] + bhn))
            h = (1.0 - z) * n + z * h
            seq_scr[t] = h                               # bounded live range

        hid_ref[l] = h.astype(hid_ref.dtype)

    # ---- output head: Linear + exact softmax, one lane-dense batch-major write ----
    seq_bm = seq_scr[...].transpose(1, 0, 2).reshape(bb * S, H)   # single transpose (H=32)
    logits = jnp.dot(seq_bm.astype(wout_ref.dtype), wout_ref[...],
                     preferred_element_type=jnp.float32) + bout_ref[...]
    m = jnp.max(logits, axis=-1, keepdims=True)
    e = jnp.exp(logits - m)
    probs = e / jnp.sum(e, axis=-1, keepdims=True)       # exact divide, off serial path
    out_ref[...] = probs.reshape(bb, S, -1).astype(out_ref.dtype)


def _replicated_spec(shape):
    """Full-array block, same block for every grid step (weights/biases)."""
    return pl.BlockSpec(shape, lambda *_: (0,) * len(shape))


# ----------------------------------------------------------------------------
# Wrapper: single fused pallas_call; optional batch sharding via a "parallel" grid
# axis (feed v7x's two TensorCores once the batch is large; keep None on v5e/v6e).
# ----------------------------------------------------------------------------
@functools.partial(jax.jit, static_argnames=("num_layers", "batch_block"))
def generator_forward(noise, hidden, params, *, num_layers, batch_block=None):
    """noise: (B, S, noise_size), hidden: (num_layers, B, H)
       -> (output: (B, S, output_size), hidden_out: (num_layers, B, H))"""
    B, S, in_dim = noise.shape
    H = hidden.shape[-1]
    O = params["w_out_t"].shape[-1]

    bb = B if batch_block is None else min(int(batch_block), B)
    assert B % bb == 0, "batch must be divisible by batch_block"
    if bb != B:
        # (8,128) BlockSpec rule: a partial batch block must be a sublane multiple.
        assert bb % 8 == 0, "batch_block must be a multiple of 8 when < batch"
    grid = (B // bb,)

    args = [noise, hidden]
    in_specs = [
        pl.BlockSpec((bb, S, in_dim), lambda b: (b, 0, 0)),           # noise (batch-first)
        pl.BlockSpec((num_layers, bb, H), lambda b: (0, b, 0)),       # h0
    ]
    for l in range(num_layers):
        wih_f, whh_f, bi_f, bhn = params["layers"][l]
        args += [wih_f, whh_f, bi_f, bhn]
        in_specs += [_replicated_spec(wih_f.shape), _replicated_spec(whh_f.shape),
                     _replicated_spec(bi_f.shape), _replicated_spec(bhn.shape)]
    args += [params["w_out_t"], params["b_out"]]
    in_specs += [_replicated_spec(params["w_out_t"].shape),
                 _replicated_spec(params["b_out"].shape)]

    out_shape = (jax.ShapeDtypeStruct((B, S, O), jnp.float32),
                 jax.ShapeDtypeStruct((num_layers, B, H), jnp.float32))
    out_specs = (pl.BlockSpec((bb, S, O), lambda b: (b, 0, 0)),
                 pl.BlockSpec((num_layers, bb, H), lambda b: (0, b, 0)))

    scratch_shapes = [
        pltpu.VMEM((S, bb, 3 * H), jnp.float32),   # time-major gx staging
        pltpu.VMEM((S, bb, H), jnp.float32),       # time-major per-step hidden outputs
    ]

    kernel = functools.partial(_generator_kernel, num_layers)
    out, hid = pl.pallas_call(
        kernel,
        out_shape=out_shape,
        grid=grid,
        in_specs=in_specs,
        out_specs=out_specs,
        scratch_shapes=scratch_shapes,
        compiler_params=pltpu.CompilerParams(dimension_semantics=("parallel",)),
    )(*args)
    return out, hid


# ----------------------------------------------------------------------------
# Parameter init (mirrors PyTorch: uniform(-1/sqrt(H), 1/sqrt(H)) for every tensor).
# Storage layout (gate order r, z, n; weights pre-transposed & gate-concatenated):
#   wih_f: (in_dim, 3H)  == concat([W_ir.T, W_iz.T, W_in.T], axis=1)   (bf16)
#   whh_f: (H, 3H)       == concat([W_hr.T, W_hz.T, W_hn.T], axis=1)   (bf16)
#   bi_f : (1, 3H)       == [bir+bhr | biz+bhz | bin]                  (f32, r/z folded)
#   bhn  : (1, H)        == bhn                                        (f32)
#   w_out_t: (H, O) == out.weight.T (bf16);  b_out: (1, O) (f32)
# ----------------------------------------------------------------------------
def init_generator_params(key, num_layers, noise_size, hidden_size, output_size,
                          param_dtype=jnp.bfloat16):
    H = hidden_size
    bound = 1.0 / (H ** 0.5)
    params = {"layers": []}
    for l in range(num_layers):
        in_dim = noise_size if l == 0 else H
        key, k1, k2, k3, k4 = jax.random.split(key, 5)
        wih = jax.random.uniform(k1, (3, in_dim, H), jnp.float32, -bound, bound)
        whh = jax.random.uniform(k2, (3, H, H), jnp.float32, -bound, bound)
        bih = jax.random.uniform(k3, (3, H), jnp.float32, -bound, bound)
        bhh = jax.random.uniform(k4, (3, H), jnp.float32, -bound, bound)
        wih_f = jnp.concatenate([wih[0], wih[1], wih[2]], axis=1).astype(param_dtype)
        whh_f = jnp.concatenate([whh[0], whh[1], whh[2]], axis=1).astype(param_dtype)
        bi_f = jnp.concatenate([bih[0] + bhh[0], bih[1] + bhh[1], bih[2]])[None, :]
        bhn = bhh[2][None, :]
        params["layers"].append((wih_f, whh_f, bi_f, bhn))
    key, k5, k6 = jax.random.split(key, 3)
    params["w_out_t"] = jax.random.uniform(k5, (H, output_size), jnp.float32,
                                           -bound, bound).astype(param_dtype)
    params["b_out"] = jax.random.uniform(k6, (1, output_size), jnp.float32, -bound, bound)
    return params


# ----------------------------------------------------------------------------
# Pure-JAX reference (same fused params / same bf16 casts) for correctness check.
# ----------------------------------------------------------------------------
@functools.partial(jax.jit, static_argnames=("num_layers",))
def reference_forward(noise, hidden, params, *, num_layers):
    B, S, _ = noise.shape
    H = hidden.shape[-1]
    seq = noise
    h_finals = []
    for l in range(num_layers):
        wih_f, whh_f, bi_f, bhn = params["layers"][l]
        wdt = wih_f.dtype
        x2d = seq.reshape(B * S, -1).astype(wdt)
        gx = (jnp.dot(x2d, wih_f, preferred_element_type=jnp.float32)
              + bi_f).reshape(B, S, 3 * H)
        h = hidden[l].astype(jnp.float32)
        ys = []
        for t in range(S):
            gh = jnp.dot(h.astype(wdt), whh_f, preferred_element_type=jnp.float32)
            gxt = gx[:, t, :]
            r = jax.nn.sigmoid(gxt[:, :H] + gh[:, :H])
            z = jax.nn.sigmoid(gxt[:, H:2 * H] + gh[:, H:2 * H])
            n = jnp.tanh(gxt[:, 2 * H:] + r * (gh[:, 2 * H:] + bhn))
            h = (1.0 - z) * n + z * h
            ys.append(h)
        h_finals.append(h)
        seq = jnp.stack(ys, axis=1)
    logits = jnp.dot(seq.reshape(B * S, H).astype(params["w_out_t"].dtype),
                     params["w_out_t"], preferred_element_type=jnp.float32) + params["b_out"]
    probs = jax.nn.softmax(logits, axis=-1)
    return probs.reshape(B, S, -1), jnp.stack(h_finals, axis=0)


if __name__ == "__main__":
    # Small shapes consistent with the module's forward.
    num_layers = 2
    noise_size = 32
    hidden_size = 32
    output_size = 128
    batch = 2
    seq_len = 8

    key = jax.random.PRNGKey(0)
    key, pkey, nkey = jax.random.split(key, 3)
    params = init_generator_params(pkey, num_layers, noise_size, hidden_size, output_size)

    noise = jax.random.normal(nkey, (batch, seq_len, noise_size), jnp.float32)
    hidden0 = jnp.zeros((num_layers, batch, hidden_size), jnp.float32)   # initHidden

    out, hidden_out = generator_forward(noise, hidden0, params, num_layers=num_layers)
    jax.block_until_ready((out, hidden_out))

    assert out.shape == (batch, seq_len, output_size)
    assert hidden_out.shape == (num_layers, batch, hidden_size)
    # exact softmax: rows sum to ~1
    assert jnp.allclose(jnp.sum(out, axis=-1), 1.0, atol=1e-5)

    # compare against pure-JAX reference using the same parameters / casts
    ref_out, ref_hid = reference_forward(noise, hidden0, params, num_layers=num_layers)
    assert jnp.allclose(out, ref_out, atol=5e-3)
    assert jnp.allclose(hidden_out, ref_hid, atol=5e-3)

    print("KERNEL_OK")
</pallas_src>

<mosaic_0001>
module attributes {stable_mosaic.version = 11 : i64} {
  func.func @_generator_kernel(%arg0: i32, %arg1: memref<2x8x32xf32, #tpu.memory_space<vmem>>, %arg2: memref<2x2x32xf32, #tpu.memory_space<vmem>>, %arg3: memref<32x96xbf16, #tpu.memory_space<vmem>>, %arg4: memref<32x96xbf16, #tpu.memory_space<vmem>>, %arg5: memref<1x96xf32, #tpu.memory_space<vmem>>, %arg6: memref<1x32xf32, #tpu.memory_space<vmem>>, %arg7: memref<32x96xbf16, #tpu.memory_space<vmem>>, %arg8: memref<32x96xbf16, #tpu.memory_space<vmem>>, %arg9: memref<1x96xf32, #tpu.memory_space<vmem>>, %arg10: memref<1x32xf32, #tpu.memory_space<vmem>>, %arg11: memref<32x128xbf16, #tpu.memory_space<vmem>>, %arg12: memref<1x128xf32, #tpu.memory_space<vmem>>, %arg13: memref<2x8x128xf32, #tpu.memory_space<vmem>>, %arg14: memref<2x2x32xf32, #tpu.memory_space<vmem>>, %arg15: memref<8x2x96xf32, #tpu.memory_space<vmem>>, %arg16: memref<8x2x32xf32, #tpu.memory_space<vmem>>) attributes {dimension_semantics = [#tpu.dimension_semantics<parallel>], iteration_bounds = array<i64: 1>, scalar_prefetch = 0 : i64, scratch_operands = 2 : i64, tpu.core_type = #tpu.core_type<tc>, window_params = [{transform_indices = @transform_0, window_bounds = array<i64: 2, 8, 32>}, {transform_indices = @transform_1, window_bounds = array<i64: 2, 2, 32>}, {pipeline_mode = #tpu.pipeline_mode<synchronous>, transform_indices = @transform_2, window_bounds = array<i64: 32, 96>}, {pipeline_mode = #tpu.pipeline_mode<synchronous>, transform_indices = @transform_3, window_bounds = array<i64: 32, 96>}, {pipeline_mode = #tpu.pipeline_mode<synchronous>, transform_indices = @transform_4, window_bounds = array<i64: 1, 96>}, {pipeline_mode = #tpu.pipeline_mode<synchronous>, transform_indices = @transform_5, window_bounds = array<i64: 1, 32>}, {pipeline_mode = #tpu.pipeline_mode<synchronous>, transform_indices = @transform_6, window_bounds = array<i64: 32, 96>}, {pipeline_mode = #tpu.pipeline_mode<synchronous>, transform_indices = @transform_7, window_bounds = array<i64: 32, 96>}, {pipeline_mode = #tpu.pipeline_mode<synchronous>, transform_indices = @transform_8, window_bounds = array<i64: 1, 96>}, {pipeline_mode = #tpu.pipeline_mode<synchronous>, transform_indices = @transform_9, window_bounds = array<i64: 1, 32>}, {pipeline_mode = #tpu.pipeline_mode<synchronous>, transform_indices = @transform_10, window_bounds = array<i64: 32, 128>}, {pipeline_mode = #tpu.pipeline_mode<synchronous>, transform_indices = @transform_11, window_bounds = array<i64: 1, 128>}, {transform_indices = @transform_12, window_bounds = array<i64: 2, 8, 128>}, {transform_indices = @transform_13, window_bounds = array<i64: 2, 2, 32>}]} {
    %c0 = arith.constant 0 : index
    %c0_0 = arith.constant 0 : index
    %c0_1 = arith.constant 0 : index
    %0 = vector.load %arg1[%c0, %c0_0, %c0_1] : memref<2x8x32xf32, #tpu.memory_space<vmem>>, vector<2x8x32xf32>
    %1 = tpu.transpose %0, [1, 0, 2] : vector<2x8x32xf32> -> vector<8x2x32xf32>
    %2 = vector.shape_cast %1 : vector<8x2x32xf32> to vector<16x32xf32>
    %3 = arith.truncf %2 : vector<16x32xf32> to vector<16x32xbf16>
    %c0_2 = arith.constant 0 : index
    %c0_3 = arith.constant 0 : index
    %4 = vector.load %arg3[%c0_2, %c0_3] : memref<32x96xbf16, #tpu.memory_space<vmem>>, vector<32x96xbf16>
    %cst = arith.constant dense<0.000000e+00> : vector<16x96xf32>
    %5 = tpu.matmul %3, %4, %cst {dimension_numbers = #tpu.dot_dimension_numbers<[1], [0], [0], [1], [0, 0, 1, 1], [], []>} : vector<16x32xbf16>, vector<32x96xbf16>, vector<16x96xf32> -> vector<16x96xf32>
    %c0_4 = arith.constant 0 : index
    %c0_5 = arith.constant 0 : index
    %6 = vector.load %arg5[%c0_4, %c0_5] : memref<1x96xf32, #tpu.memory_space<vmem>>, vector<1x96xf32>
    %7 = vector.broadcast %6 : vector<1x96xf32> to vector<16x96xf32>
    %8 = arith.addf %5, %7 : vector<16x96xf32>
    %9 = vector.shape_cast %8 : vector<16x96xf32> to vector<8x2x96xf32>
    %c0_6 = arith.constant 0 : index
    %c0_7 = arith.constant 0 : index
    %c0_8 = arith.constant 0 : index
    %10 = vector.load %arg15[%c0_6, %c0_7, %c0_8] : memref<8x2x96xf32, #tpu.memory_space<vmem>>, vector<8x2x96xf32>
    tpu.vector_store %arg15[%c0_6, %c0_7, %c0_8], %9 {strides = array<i32>} : memref<8x2x96xf32, #tpu.memory_space<vmem>>, vector<8x2x96xf32>,
    %c0_9 = arith.constant 0 : index
    %c0_10 = arith.constant 0 : index
    %11 = vector.load %arg4[%c0_9, %c0_10] : memref<32x96xbf16, #tpu.memory_space<vmem>>, vector<32x96xbf16>
    %c0_11 = arith.constant 0 : index
    %c0_12 = arith.constant 0 : index
    %12 = vector.load %arg6[%c0_11, %c0_12] : memref<1x32xf32, #tpu.memory_space<vmem>>, vector<1x32xf32>
    %c0_13 = arith.constant 0 : index
    %c0_14 = arith.constant 0 : index
    %c0_15 = arith.constant 0 : index
    %13 = vector.load %arg2[%c0_13, %c0_14, %c0_15] : memref<2x2x32xf32, #tpu.memory_space<vmem>>, vector<1x2x32xf32>
    %14 = vector.shape_cast %13 : vector<1x2x32xf32> to vector<2x32xf32>
    %15 = arith.truncf %14 : vector<2x32xf32> to vector<2x32xbf16>
    %cst_16 = arith.constant dense<0.000000e+00> : vector<2x96xf32>
    %16 = tpu.matmul %15, %11, %cst_16 {dimension_numbers = #tpu.dot_dimension_numbers<[1], [0], [0], [1], [0, 0, 1, 1], [], []>} : vector<2x32xbf16>, vector<32x96xbf16>, vector<2x96xf32> -> vector<2x96xf32>
    %c0_17 = arith.constant 0 : index
    %c0_18 = arith.constant 0 : index
    %c0_19 = arith.constant 0 : index
    %17 = vector.load %arg15[%c0_17, %c0_18, %c0_19] : memref<8x2x96xf32, #tpu.memory_space<vmem>>, vector<1x2x96xf32>
    %18 = vector.shape_cast %17 : vector<1x2x96xf32> to vector<2x96xf32>
    %19 = vector.extract_strided_slice %18 {offsets = [0, 0], sizes = [2, 64], strides = [1, 1]} : vector<2x96xf32> to vector<2x64xf32>
    %20 = vector.extract_strided_slice %16 {offsets = [0, 0], sizes = [2, 64], strides = [1, 1]} : vector<2x96xf32> to vector<2x64xf32>
    %21 = arith.addf %19, %20 : vector<2x64xf32>
    %22 = arith.negf %21 : vector<2x64xf32>
    %23 = math.exp %22 : vector<2x64xf32>
    %cst_20 = arith.constant 1.000000e+00 : f32
    %24 = vector.broadcast %cst_20 : f32 to vector<2x64xf32>
    %25 = arith.addf %24, %23 : vector<2x64xf32>
    %26 = arith.divf %24, %25 : vector<2x64xf32>
    %27 = vector.extract_strided_slice %26 {offsets = [0, 0], sizes = [2, 32], strides = [1, 1]} : vector<2x64xf32> to vector<2x32xf32>
    %28 = vector.extract_strided_slice %26 {offsets = [0, 32], sizes = [2, 32], strides = [1, 1]} : vector<2x64xf32> to vector<2x32xf32>
    %29 = vector.extract_strided_slice %18 {offsets = [0, 64], sizes = [2, 32], strides = [1, 1]} : vector<2x96xf32> to vector<2x32xf32>
    %30 = vector.extract_strided_slice %16 {offsets = [0, 64], sizes = [2, 32], strides = [1, 1]} : vector<2x96xf32> to vector<2x32xf32>
    %31 = vector.broadcast %12 : vector<1x32xf32> to vector<2x32xf32>
    %32 = arith.addf %30, %31 : vector<2x32xf32>
    %33 = arith.mulf %27, %32 : vector<2x32xf32>
    %34 = arith.addf %29, %33 : vector<2x32xf32>
    %35 = math.tanh %34 : vector<2x32xf32>
    %cst_21 = arith.constant 1.000000e+00 : f32
    %36 = vector.broadcast %cst_21 : f32 to vector<2x32xf32>
    %37 = arith.subf %36, %28 : vector<2x32xf32>
    %38 = arith.mulf %37, %35 : vector<2x32xf32>
    %39 = arith.mulf %28, %14 : vector<2x32xf32>
    %40 = arith.addf %38, %39 : vector<2x32xf32>
    %c0_22 = arith.constant 0 : index
    %c0_23 = arith.constant 0 : index
    %c0_24 = arith.constant 0 : index
    %41 = vector.load %arg16[%c0_22, %c0_23, %c0_24] : memref<8x2x32xf32, #tpu.memory_space<vmem>>, vector<1x2x32xf32>
    %42 = vector.shape_cast %41 : vector<1x2x32xf32> to vector<2x32xf32>
    %43 = vector.shape_cast %40 : vector<2x32xf32> to vector<1x2x32xf32>
    tpu.vector_store %arg16[%c0_22, %c0_23, %c0_24], %43 {strides = array<i32>} : memref<8x2x32xf32, #tpu.memory_space<vmem>>, vector<1x2x32xf32>,
    %44 = arith.truncf %40 : vector<2x32xf32> to vector<2x32xbf16>
    %cst_25 = arith.constant dense<0.000000e+00> : vector<2x96xf32>
    %45 = tpu.matmul %44, %11, %cst_25 {dimension_numbers = #tpu.dot_dimension_numbers<[1], [0], [0], [1], [0, 0, 1, 1], [], []>} : vector<2x32xbf16>, vector<32x96xbf16>, vector<2x96xf32> -> vector<2x96xf32>
    %c1 = arith.constant 1 : index
    %c0_26 = arith.constant 0 : index
    %c0_27 = arith.constant 0 : index
    %46 = vector.load %arg15[%c1, %c0_26, %c0_27] : memref<8x2x96xf32, #tpu.memory_space<vmem>>, vector<1x2x96xf32>
    %47 = vector.shape_cast %46 : vector<1x2x96xf32> to vector<2x96xf32>
    %48 = vector.extract_strided_slice %47 {offsets = [0, 0], sizes = [2, 64], strides = [1, 1]} : vector<2x96xf32> to vector<2x64xf32>
    %49 = vector.extract_strided_slice %45 {offsets = [0, 0], sizes = [2, 64], strides = [1, 1]} : vector<2x96xf32> to vector<2x64xf32>
    %50 = arith.addf %48, %49 : vector<2x64xf32>
    %51 = arith.negf %50 : vector<2x64xf32>
    %52 = math.exp %51 : vector<2x64xf32>
    %cst_28 = arith.constant 1.000000e+00 : f32
    %53 = vector.broadcast %cst_28 : f32 to vector<2x64xf32>
    %54 = arith.addf %53, %52 : vector<2x64xf32>
    %55 = arith.divf %53, %54 : vector<2x64xf32>
    %56 = vector.extract_strided_slice %55 {offsets = [0, 0], sizes = [2, 32], strides = [1, 1]} : vector<2x64xf32> to vector<2x32xf32>
    %57 = vector.extract_strided_slice %55 {offsets = [0, 32], sizes = [2, 32], strides = [1, 1]} : vector<2x64xf32> to vector<2x32xf32>
    %58 = vector.extract_strided_slice %47 {offsets = [0, 64], sizes = [2, 32], strides = [1, 1]} : vector<2x96xf32> to vector<2x32xf32>
    %59 = vector.extract_strided_slice %45 {offsets = [0, 64], sizes = [2, 32], strides = [1, 1]} : vector<2x96xf32> to vector<2x32xf32>
    %60 = vector.broadcast %12 : vector<1x32xf32> to vector<2x32xf32>
    %61 = arith.addf %59, %60 : vector<2x32xf32>
    %62 = arith.mulf %56, %61 : vector<2x32xf32>
    %63 = arith.addf %58, %62 : vector<2x32xf32>
    %64 = math.tanh %63 : vector<2x32xf32>
    %cst_29 = arith.constant 1.000000e+00 : f32
    %65 = vector.broadcast %cst_29 : f32 to vector<2x32xf32>
    %66 = arith.subf %65, %57 : vector<2x32xf32>
    %67 = arith.mulf %66, %64 : vector<2x32xf32>
    %68 = arith.mulf %57, %40 : vector<2x32xf32>
    %69 = arith.addf %67, %68 : vector<2x32xf32>
    %c1_30 = arith.constant 1 : index
    %c0_31 = arith.constant 0 : index
    %c0_32 = arith.constant 0 : index
    %70 = vector.load %arg16[%c1_30, %c0_31, %c0_32] : memref<8x2x32xf32, #tpu.memory_space<vmem>>, vector<1x2x32xf32>
    %71 = vector.shape_cast %70 : vector<1x2x32xf32> to vector<2x32xf32>
    %72 = vector.shape_cast %69 : vector<2x32xf32> to vector<1x2x32xf32>
    tpu.vector_store %arg16[%c1_30, %c0_31, %c0_32], %72 {strides = array<i32>} : memref<8x2x32xf32, #tpu.memory_space<vmem>>, vector<1x2x32xf32>,
    %73 = arith.truncf %69 : vector<2x32xf32> to vector<2x32xbf16>
    %cst_33 = arith.constant dense<0.000000e+00> : vector<2x96xf32>
    %74 = tpu.matmul %73, %11, %cst_33 {dimension_numbers = #tpu.dot_dimension_numbers<[1], [0], [0], [1], [0, 0, 1, 1], [], []>} : vector<2x32xbf16>, vector<32x96xbf16>, vector<2x96xf32> -> vector<2x96xf32>
    %c2 = arith.constant 2 : index
    %c0_34 = arith.constant 0 : index
    %c0_35 = arith.constant 0 : index
    %75 = vector.load %arg15[%c2, %c0_34, %c0_35] : memref<8x2x96xf32, #tpu.memory_space<vmem>>, vector<1x2x96xf32>
    %76 = vector.shape_cast %75 : vector<1x2x96xf32> to vector<2x96xf32>
    %77 = vector.extract_strided_slice %76 {offsets = [0, 0], sizes = [2, 64], strides = [1, 1]} : vector<2x96xf32> to vector<2x64xf32>
    %78 = vector.extract_strided_slice %74 {offsets = [0, 0], sizes = [2, 64], strides = [1, 1]} : vector<2x96xf32> to vector<2x64xf32>
    %79 = arith.addf %77, %78 : vector<2x64xf32>
    %80 = arith.negf %79 : vector<2x64xf32>
    %81 = math.exp %80 : vector<2x64xf32>
    %cst_36 = arith.constant 1.000000e+00 : f32
    %82 = vector.broadcast %cst_36 : f32 to vector<2x64xf32>
    %83 = arith.addf %82, %81 : vector<2x64xf32>
    %84 = arith.divf %82, %83 : vector<2x64xf32>
    %85 = vector.extract_strided_slice %84 {offsets = [0, 0], sizes = [2, 32], strides = [1, 1]} : vector<2x64xf32> to vector<2x32xf32>
    %86 = vector.extract_strided_slice %84 {offsets = [0, 32], sizes = [2, 32], strides = [1, 1]} : vector<2x64xf32> to vector<2x32xf32>
    %87 = vector.extract_strided_slice %76 {offsets = [0, 64], sizes = [2, 32], strides = [1, 1]} : vector<2x96xf32> to vector<2x32xf32>
    %88 = vector.extract_strided_slice %74 {offsets = [0, 64], sizes = [2, 32], strides = [1, 1]} : vector<2x96xf32> to vector<2x32xf32>
    %89 = vector.broadcast %12 : vector<1x32xf32> to vector<2x32xf32>
    %90 = arith.addf %88, %89 : vector<2x32xf32>
    %91 = arith.mulf %85, %90 : vector<2x32xf32>
    %92 = arith.addf %87, %91 : vector<2x32xf32>
    %93 = math.tanh %92 : vector<2x32xf32>
    %cst_37 = arith.constant 1.000000e+00 : f32
    %94 = vector.broadcast %cst_37 : f32 to vector<2x32xf32>
    %95 = arith.subf %94, %86 : vector<2x32xf32>
    %96 = arith.mulf %95, %93 : vector<2x32xf32>
    %97 = arith.mulf %86, %69 : vector<2x32xf32>
    %98 = arith.addf %96, %97 : vector<2x32xf32>
    %c2_38 = arith.constant 2 : index
    %c0_39 = arith.constant 0 : index
    %c0_40 = arith.constant 0 : index
    %99 = vector.load %arg16[%c2_38, %c0_39, %c0_40] : memref<8x2x32xf32, #tpu.memory_space<vmem>>, vector<1x2x32xf32>
    %100 = vector.shape_cast %99 : vector<1x2x32xf32> to vector<2x32xf32>
    %101 = vector.shape_cast %98 : vector<2x32xf32> to vector<1x2x32xf32>
    tpu.vector_store %arg16[%c2_38, %c0_39, %c0_40], %101 {strides = array<i32>} : memref<8x2x32xf32, #tpu.memory_space<vmem>>, vector<1x2x32xf32>,
    %102 = arith.truncf %98 : vector<2x32xf32> to vector<2x32xbf16>
    %cst_41 = arith.constant dense<0.000000e+00> : vector<2x96xf32>
    %103 = tpu.matmul %102, %11, %cst_41 {dimension_numbers = #tpu.dot_dimension_numbers<[1], [0], [0], [1], [0, 0, 1, 1], [], []>} : vector<2x32xbf16>, vector<32x96xbf16>, vector<2x96xf32> -> vector<2x96xf32>
    %c3 = arith.constant 3 : index
    %c0_42 = arith.constant 0 : index
    %c0_43 = arith.constant 0 : index
    %104 = vector.load %arg15[%c3, %c0_42, %c0_43] : memref<8x2x96xf32, #tpu.memory_space<vmem>>, vector<1x2x96xf32>
    %105 = vector.shape_cast %104 : vector<1x2x96xf32> to vector<2x96xf32>
    %106 = vector.extract_strided_slice %105 {offsets = [0, 0], sizes = [2, 64], strides = [1, 1]} : vector<2x96xf32> to vector<2x64xf32>
    %107 = vector.extract_strided_slice %103 {offsets = [0, 0], sizes = [2, 64], strides = [1, 1]} : vector<2x96xf32> to vector<2x64xf32>
    %108 = arith.addf %106, %107 : vector<2x64xf32>
    %109 = arith.negf %108 : vector<2x64xf32>
    %110 = math.exp %109 : vector<2x64xf32>
    %cst_44 = arith.constant 1.000000e+00 : f32
    %111 = vector.broadcast %cst_44 : f32 to vector<2x64xf32>
    %112 = arith.addf %111, %110 : vector<2x64xf32>
    %113 = arith.divf %111, %112 : vector<2x64xf32>
    %114 = vector.extract_strided_slice %113 {offsets = [0, 0], sizes = [2, 32], strides = [1, 1]} : vector<2x64xf32> to vector<2x32xf32>
    %115 = vector.extract_strided_slice %113 {offsets = [0, 32], sizes = [2, 32], strides = [1, 1]} : vector<2x64xf32> to vector<2x32xf32>
    %116 = vector.extract_strided_slice %105 {offsets = [0, 64], sizes = [2, 32], strides = [1, 1]} : vector<2x96xf32> to vector<2x32xf32>
    %117 = vector.extract_strided_slice %103 {offsets = [0, 64], sizes = [2, 32], strides = [1, 1]} : vector<2x96xf32> to vector<2x32xf32>
    %118 = vector.broadcast %12 : vector<1x32xf32> to vector<2x32xf32>
    %119 = arith.addf %117, %118 : vector<2x32xf32>
    %120 = arith.mulf %114, %119 : vector<2x32xf32>
    %121 = arith.addf %116, %120 : vector<2x32xf32>
    %122 = math.tanh %121 : vector<2x32xf32>
    %cst_45 = arith.constant 1.000000e+00 : f32
    %123 = vector.broadcast %cst_45 : f32 to vector<2x32xf32>
    %124 = arith.subf %123, %115 : vector<2x32xf32>
    %125 = arith.mulf %124, %122 : vector<2x32xf32>
    %126 = arith.mulf %115, %98 : vector<2x32xf32>
    %127 = arith.addf %125, %126 : vector<2x32xf32>
    %c3_46 = arith.constant 3 : index
    %c0_47 = arith.constant 0 : index
    %c0_48 = arith.constant 0 : index
    %128 = vector.load %arg16[%c3_46, %c0_47, %c0_48] : memref<8x2x32xf32, #tpu.memory_space<vmem>>, vector<1x2x32xf32>
    %129 = vector.shape_cast %128 : vector<1x2x32xf32> to vector<2x32xf32>
    %130 = vector.shape_cast %127 : vector<2x32xf32> to vector<1x2x32xf32>
    tpu.vector_store %arg16[%c3_46, %c0_47, %c0_48], %130 {strides = array<i32>} : memref<8x2x32xf32, #tpu.memory_space<vmem>>, vector<1x2x32xf32>,
    %131 = arith.truncf %127 : vector<2x32xf32> to vector<2x32xbf16>
    %cst_49 = arith.constant dense<0.000000e+00> : vector<2x96xf32>
    %132 = tpu.matmul %131, %11, %cst_49 {dimension_numbers = #tpu.dot_dimension_numbers<[1], [0], [0], [1], [0, 0, 1, 1], [], []>} : vector<2x32xbf16>, vector<32x96xbf16>, vector<2x96xf32> -> vector<2x96xf32>
    %c4 = arith.constant 4 : index
    %c0_50 = arith.constant 0 : index
    %c0_51 = arith.constant 0 : index
    %133 = vector.load %arg15[%c4, %c0_50, %c0_51] : memref<8x2x96xf32, #tpu.memory_space<vmem>>, vector<1x2x96xf32>
    %134 = vector.shape_cast %133 : vector<1x2x96xf32> to vector<2x96xf32>
    %135 = vector.extract_strided_slice %134 {offsets = [0, 0], sizes = [2, 64], strides = [1, 1]} : vector<2x96xf32> to vector<2x64xf32>
    %136 = vector.extract_strided_slice %132 {offsets = [0, 0], sizes = [2, 64], strides = [1, 1]} : vector<2x96xf32> to vector<2x64xf32>
    %137 = arith.addf %135, %136 : vector<2x64xf32>
    %138 = arith.negf %137 : vector<2x64xf32>
    %139 = math.exp %138 : vector<2x64xf32>
    %cst_52 = arith.constant 1.000000e+00 : f32
    %140 = vector.broadcast %cst_52 : f32 to vector<2x64xf32>
    %141 = arith.addf %140, %139 : vector<2x64xf32>
    %142 = arith.divf %140, %141 : vector<2x64xf32>
    %143 = vector.extract_strided_slice %142 {offsets = [0, 0], sizes = [2, 32], strides = [1, 1]} : vector<2x64xf32> to vector<2x32xf32>
    %144 = vector.extract_strided_slice %142 {offsets = [0, 32], sizes = [2, 32], strides = [1, 1]} : vector<2x64xf32> to vector<2x32xf32>
    %145 = vector.extract_strided_slice %134 {offsets = [0, 64], sizes = [2, 32], strides = [1, 1]} : vector<2x96xf32> to vector<2x32xf32>
    %146 = vector.extract_strided_slice %132 {offsets = [0, 64], sizes = [2, 32], strides = [1, 1]} : vector<2x96xf32> to vector<2x32xf32>
    %147 = vector.broadcast %12 : vector<1x32xf32> to vector<2x32xf32>
    %148 = arith.addf %146, %147 : vector<2x32xf32>
    %149 = arith.mulf %143, %148 : vector<2x32xf32>
    %150 = arith.addf %145, %149 : vector<2x32xf32>
    %151 = math.tanh %150 : vector<2x32xf32>
    %cst_53 = arith.constant 1.000000e+00 : f32
    %152 = vector.broadcast %cst_53 : f32 to vector<2x32xf32>
    %153 = arith.subf %152, %144 : vector<2x32xf32>
    %154 = arith.mulf %153, %151 : vector<2x32xf32>
    %155 = arith.mulf %144, %127 : vector<2x32xf32>
    %156 = arith.addf %154, %155 : vector<2x32xf32>
    %c4_54 = arith.constant 4 : index
    %c0_55 = arith.constant 0 : index
    %c0_56 = arith.constant 0 : index
    %157 = vector.load %arg16[%c4_54, %c0_55, %c0_56] : memref<8x2x32xf32, #tpu.memory_space<vmem>>, vector<1x2x32xf32>
    %158 = vector.shape_cast %157 : vector<1x2x32xf32> to vector<2x32xf32>
    %159 = vector.shape_cast %156 : vector<2x32xf32> to vector<1x2x32xf32>
    tpu.vector_store %arg16[%c4_54, %c0_55, %c0_56], %159 {strides = array<i32>} : memref<8x2x32xf32, #tpu.memory_space<vmem>>, vector<1x2x32xf32>,
    %160 = arith.truncf %156 : vector<2x32xf32> to vector<2x32xbf16>
    %cst_57 = arith.constant dense<0.000000e+00> : vector<2x96xf32>
    %161 = tpu.matmul %160, %11, %cst_57 {dimension_numbers = #tpu.dot_dimension_numbers<[1], [0], [0], [1], [0, 0, 1, 1], [], []>} : vector<2x32xbf16>, vector<32x96xbf16>, vector<2x96xf32> -> vector<2x96xf32>
    %c5 = arith.constant 5 : index
    %c0_58 = arith.constant 0 : index
    %c0_59 = arith.constant 0 : index
    %162 = vector.load %arg15[%c5, %c0_58, %c0_59] : memref<8x2x96xf32, #tpu.memory_space<vmem>>, vector<1x2x96xf32>
    %163 = vector.shape_cast %162 : vector<1x2x96xf32> to vector<2x96xf32>
    %164 = vector.extract_strided_slice %163 {offsets = [0, 0], sizes = [2, 64], strides = [1, 1]} : vector<2x96xf32> to vector<2x64xf32>
    %165 = vector.extract_strided_slice %161 {offsets = [0, 0], sizes = [2, 64], strides = [1, 1]} : vector<2x96xf32> to vector<2x64xf32>
    %166 = arith.addf %164, %165 : vector<2x64xf32>
    %167 = arith.negf %166 : vector<2x64xf32>
    %168 = math.exp %167 : vector<2x64xf32>
    %cst_60 = arith.constant 1.000000e+00 : f32
    %169 = vector.broadcast %cst_60 : f32 to vector<2x64xf32>
    %170 = arith.addf %169, %168 : vector<2x64xf32>
    %171 = arith.divf %169, %170 : vector<2x64xf32>
    %172 = vector.extract_strided_slice %171 {offsets = [0, 0], sizes = [2, 32], strides = [1, 1]} : vector<2x64xf32> to vector<2x32xf32>
    %173 = vector.extract_strided_slice %171 {offsets = [0, 32], sizes = [2, 32], strides = [1, 1]} : vector<2x64xf32> to vector<2x32xf32>
    %174 = vector.extract_strided_slice %163 {offsets = [0, 64], sizes = [2, 32], strides = [1, 1]} : vector<2x96xf32> to vector<2x32xf32>
    %175 = vector.extract_strided_slice %161 {offsets = [0, 64], sizes = [2, 32], strides = [1, 1]} : vector<2x96xf32> to vector<2x32xf32>
    %176 = vector.broadcast %12 : vector<1x32xf32> to vector<2x32xf32>
    %177 = arith.addf %175, %176 : vector<2x32xf32>
    %178 = arith.mulf %172, %177 : vector<2x32xf32>
    %179 = arith.addf %174, %178 : vector<2x32xf32>
    %180 = math.tanh %179 : vector<2x32xf32>
    %cst_61 = arith.constant 1.000000e+00 : f32
    %181 = vector.broadcast %cst_61 : f32 to vector<2x32xf32>
    %182 = arith.subf %181, %173 : vector<2x32xf32>
    %183 = arith.mulf %182, %180 : vector<2x32xf32>
    %184 = arith.mulf %173, %156 : vector<2x32xf32>
    %185 = arith.addf %183, %184 : vector<2x32xf32>
    %c5_62 = arith.constant 5 : index
    %c0_63 = arith.constant 0 : index
    %c0_64 = arith.constant 0 : index
    %186 = vector.load %arg16[%c5_62, %c0_63, %c0_64] : memref<8x2x32xf32, #tpu.memory_space<vmem>>, vector<1x2x32xf32>
    %187 = vector.shape_cast %186 : vector<1x2x32xf32> to vector<2x32xf32>
    %188 = vector.shape_cast %185 : vector<2x32xf32> to vector<1x2x32xf32>
    tpu.vector_store %arg16[%c5_62, %c0_63, %c0_64], %188 {strides = array<i32>} : memref<8x2x32xf32, #tpu.memory_space<vmem>>, vector<1x2x32xf32>,
    %189 = arith.truncf %185 : vector<2x32xf32> to vector<2x32xbf16>
    %cst_65 = arith.constant dense<0.000000e+00> : vector<2x96xf32>
    %190 = tpu.matmul %189, %11, %cst_65 {dimension_numbers = #tpu.dot_dimension_numbers<[1], [0], [0], [1], [0, 0, 1, 1], [], []>} : vector<2x32xbf16>, vector<32x96xbf16>, vector<2x96xf32> -> vector<2x96xf32>
    %c6 = arith.constant 6 : index
    %c0_66 = arith.constant 0 : index
    %c0_67 = arith.constant 0 : index
    %191 = vector.load %arg15[%c6, %c0_66, %c0_67] : memref<8x2x96xf32, #tpu.memory_space<vmem>>, vector<1x2x96xf32>
    %192 = vector.shape_cast %191 : vector<1x2x96xf32> to vector<2x96xf32>
    %193 = vector.extract_strided_slice %192 {offsets = [0, 0], sizes = [2, 64], strides = [1, 1]} : vector<2x96xf32> to vector<2x64xf32>
    %194 = vector.extract_strided_slice %190 {offsets = [0, 0], sizes = [2, 64], strides = [1, 1]} : vector<2x96xf32> to vector<2x64xf32>
    %195 = arith.addf %193, %194 : vector<2x64xf32>
    %196 = arith.negf %195 : vector<2x64xf32>
    %197 = math.exp %196 : vector<2x64xf32>
    %cst_68 = arith.constant 1.000000e+00 : f32
    %198 = vector.broadcast %cst_68 : f32 to vector<2x64xf32>
    %199 = arith.addf %198, %197 : vector<2x64xf32>
    %200 = arith.divf %198, %199 : vector<2x64xf32>
    %201 = vector.extract_strided_slice %200 {offsets = [0, 0], sizes = [2, 32], strides = [1, 1]} : vector<2x64xf32> to vector<2x32xf32>
    %202 = vector.extract_strided_slice %200 {offsets = [0, 32], sizes = [2, 32], strides = [1, 1]} : vector<2x64xf32> to vector<2x32xf32>
    %203 = vector.extract_strided_slice %192 {offsets = [0, 64], sizes = [2, 32], strides = [1, 1]} : vector<2x96xf32> to vector<2x32xf32>
    %204 = vector.extract_strided_slice %190 {offsets = [0, 64], sizes = [2, 32], strides = [1, 1]} : vector<2x96xf32> to vector<2x32xf32>
    %205 = vector.broadcast %12 : vector<1x32xf32> to vector<2x32xf32>
    %206 = arith.addf %204, %205 : vector<2x32xf32>
    %207 = arith.mulf %201, %206 : vector<2x32xf32>
    %208 = arith.addf %203, %207 : vector<2x32xf32>
    %209 = math.tanh %208 : vector<2x32xf32>
    %cst_69 = arith.constant 1.000000e+00 : f32
    %210 = vector.broadcast %cst_69 : f32 to vector<2x32xf32>
    %211 = arith.subf %210, %202 : vector<2x32xf32>
    %212 = arith.mulf %211, %209 : vector<2x32xf32>
    %213 = arith.mulf %202, %185 : vector<2x32xf32>
    %214 = arith.addf %212, %213 : vector<2x32xf32>
    %c6_70 = arith.constant 6 : index
    %c0_71 = arith.constant 0 : index
    %c0_72 = arith.constant 0 : index
    %215 = vector.load %arg16[%c6_70, %c0_71, %c0_72] : memref<8x2x32xf32, #tpu.memory_space<vmem>>, vector<1x2x32xf32>
    %216 = vector.shape_cast %215 : vector<1x2x32xf32> to vector<2x32xf32>
    %217 = vector.shape_cast %214 : vector<2x32xf32> to vector<1x2x32xf32>
    tpu.vector_store %arg16[%c6_70, %c0_71, %c0_72], %217 {strides = array<i32>} : memref<8x2x32xf32, #tpu.memory_space<vmem>>, vector<1x2x32xf32>,
    %218 = arith.truncf %214 : vector<2x32xf32> to vector<2x32xbf16>
    %cst_73 = arith.constant dense<0.000000e+00> : vector<2x96xf32>
    %219 = tpu.matmul %218, %11, %cst_73 {dimension_numbers = #tpu.dot_dimension_numbers<[1], [0], [0], [1], [0, 0, 1, 1], [], []>} : vector<2x32xbf16>, vector<32x96xbf16>, vector<2x96xf32> -> vector<2x96xf32>
    %c7 = arith.constant 7 : index
    %c0_74 = arith.constant 0 : index
    %c0_75 = arith.constant 0 : index
    %220 = vector.load %arg15[%c7, %c0_74, %c0_75] : memref<8x2x96xf32, #tpu.memory_space<vmem>>, vector<1x2x96xf32>
    %221 = vector.shape_cast %220 : vector<1x2x96xf32> to vector<2x96xf32>
    %222 = vector.extract_strided_slice %221 {offsets = [0, 0], sizes = [2, 64], strides = [1, 1]} : vector<2x96xf32> to vector<2x64xf32>
    %223 = vector.extract_strided_slice %219 {offsets = [0, 0], sizes = [2, 64], strides = [1, 1]} : vector<2x96xf32> to vector<2x64xf32>
    %224 = arith.addf %222, %223 : vector<2x64xf32>
    %225 = arith.negf %224 : vector<2x64xf32>
    %226 = math.exp %225 : vector<2x64xf32>
    %cst_76 = arith.constant 1.000000e+00 : f32
    %227 = vector.broadcast %cst_76 : f32 to vector<2x64xf32>
    %228 = arith.addf %227, %226 : vector<2x64xf32>
    %229 = arith.divf %227, %228 : vector<2x64xf32>
    %230 = vector.extract_strided_slice %229 {offsets = [0, 0], sizes = [2, 32], strides = [1, 1]} : vector<2x64xf32> to vector<2x32xf32>
    %231 = vector.extract_strided_slice %229 {offsets = [0, 32], sizes = [2, 32], strides = [1, 1]} : vector<2x64xf32> to vector<2x32xf32>
    %232 = vector.extract_strided_slice %221 {offsets = [0, 64], sizes = [2, 32], strides = [1, 1]} : vector<2x96xf32> to vector<2x32xf32>
    %233 = vector.extract_strided_slice %219 {offsets = [0, 64], sizes = [2, 32], strides = [1, 1]} : vector<2x96xf32> to vector<2x32xf32>
    %234 = vector.broadcast %12 : vector<1x32xf32> to vector<2x32xf32>
    %235 = arith.addf %233, %234 : vector<2x32xf32>
    %236 = arith.mulf %230, %235 : vector<2x32xf32>
    %237 = arith.addf %232, %236 : vector<2x32xf32>
    %238 = math.tanh %237 : vector<2x32xf32>
    %cst_77 = arith.constant 1.000000e+00 : f32
    %239 = vector.broadcast %cst_77 : f32 to vector<2x32xf32>
    %240 = arith.subf %239, %231 : vector<2x32xf32>
    %241 = arith.mulf %240, %238 : vector<2x32xf32>
    %242 = arith.mulf %231, %214 : vector<2x32xf32>
    %243 = arith.addf %241, %242 : vector<2x32xf32>
    %c7_78 = arith.constant 7 : index
    %c0_79 = arith.constant 0 : index
    %c0_80 = arith.constant 0 : index
    %244 = vector.load %arg16[%c7_78, %c0_79, %c0_80] : memref<8x2x32xf32, #tpu.memory_space<vmem>>, vector<1x2x32xf32>
    %245 = vector.shape_cast %244 : vector<1x2x32xf32> to vector<2x32xf32>
    %246 = vector.shape_cast %243 : vector<2x32xf32> to vector<1x2x32xf32>
    tpu.vector_store %arg16[%c7_78, %c0_79, %c0_80], %246 {strides = array<i32>} : memref<8x2x32xf32, #tpu.memory_space<vmem>>, vector<1x2x32xf32>,
    %c0_81 = arith.constant 0 : index
    %c0_82 = arith.constant 0 : index
    %c0_83 = arith.constant 0 : index
    %247 = vector.load %arg14[%c0_81, %c0_82, %c0_83] : memref<2x2x32xf32, #tpu.memory_space<vmem>>, vector<1x2x32xf32>
    %248 = vector.shape_cast %247 : vector<1x2x32xf32> to vector<2x32xf32>
    %249 = vector.shape_cast %243 : vector<2x32xf32> to vector<1x2x32xf32>
    tpu.vector_store %arg14[%c0_81, %c0_82, %c0_83], %249 {strides = array<i32>} : memref<2x2x32xf32, #tpu.memory_space<vmem>>, vector<1x2x32xf32>,
    %c0_84 = arith.constant 0 : index
    %c0_85 = arith.constant 0 : index
    %c0_86 = arith.constant 0 : index
    %250 = vector.load %arg16[%c0_84, %c0_85, %c0_86] : memref<8x2x32xf32, #tpu.memory_space<vmem>>, vector<8x2x32xf32>
    %251 = vector.shape_cast %250 : vector<8x2x32xf32> to vector<16x32xf32>
    %252 = arith.truncf %251 : vector<16x32xf32> to vector<16x32xbf16>
    %c0_87 = arith.constant 0 : index
    %c0_88 = arith.constant 0 : index
    %253 = vector.load %arg7[%c0_87, %c0_88] : memref<32x96xbf16, #tpu.memory_space<vmem>>, vector<32x96xbf16>
    %cst_89 = arith.constant dense<0.000000e+00> : vector<16x96xf32>
    %254 = tpu.matmul %252, %253, %cst_89 {dimension_numbers = #tpu.dot_dimension_numbers<[1], [0], [0], [1], [0, 0, 1, 1], [], []>} : vector<16x32xbf16>, vector<32x96xbf16>, vector<16x96xf32> -> vector<16x96xf32>
    %c0_90 = arith.constant 0 : index
    %c0_91 = arith.constant 0 : index
    %255 = vector.load %arg9[%c0_90, %c0_91] : memref<1x96xf32, #tpu.memory_space<vmem>>, vector<1x96xf32>
    %256 = vector.broadcast %255 : vector<1x96xf32> to vector<16x96xf32>
    %257 = arith.addf %254, %256 : vector<16x96xf32>
    %258 = vector.shape_cast %257 : vector<16x96xf32> to vector<8x2x96xf32>
    %c0_92 = arith.constant 0 : index
    %c0_93 = arith.constant 0 : index
    %c0_94 = arith.constant 0 : index
    %259 = vector.load %arg15[%c0_92, %c0_93, %c0_94] : memref<8x2x96xf32, #tpu.memory_space<vmem>>, vector<8x2x96xf32>
    tpu.vector_store %arg15[%c0_92, %c0_93, %c0_94], %258 {strides = array<i32>} : memref<8x2x96xf32, #tpu.memory_space<vmem>>, vector<8x2x96xf32>,
    %c0_95 = arith.constant 0 : index
    %c0_96 = arith.constant 0 : index
    %260 = vector.load %arg8[%c0_95, %c0_96] : memref<32x96xbf16, #tpu.memory_space<vmem>>, vector<32x96xbf16>
    %c0_97 = arith.constant 0 : index
    %c0_98 = arith.constant 0 : index
    %261 = vector.load %arg10[%c0_97, %c0_98] : memref<1x32xf32, #tpu.memory_space<vmem>>, vector<1x32xf32>
    %c1_99 = arith.constant 1 : index
    %c0_100 = arith.constant 0 : index
    %c0_101 = arith.constant 0 : index
    %262 = vector.load %arg2[%c1_99, %c0_100, %c0_101] : memref<2x2x32xf32, #tpu.memory_space<vmem>>, vector<1x2x32xf32>
    %263 = vector.shape_cast %262 : vector<1x2x32xf32> to vector<2x32xf32>
    %264 = arith.truncf %263 : vector<2x32xf32> to vector<2x32xbf16>
    %cst_102 = arith.constant dense<0.000000e+00> : vector<2x96xf32>
    %265 = tpu.matmul %264, %260, %cst_102 {dimension_numbers = #tpu.dot_dimension_numbers<[1], [0], [0], [1], [0, 0, 1, 1], [], []>} : vector<2x32xbf16>, vector<32x96xbf16>, vector<2x96xf32> -> vector<2x96xf32>
    %c0_103 = arith.constant 0 : index
    %c0_104 = arith.constant 0 : index
    %c0_105 = arith.constant 0 : index
    %266 = vector.load %arg15[%c0_103, %c0_104, %c0_105] : memref<8x2x96xf32, #tpu.memory_space<vmem>>, vector<1x2x96xf32>
    %267 = vector.shape_cast %266 : vector<1x2x96xf32> to vector<2x96xf32>
    %268 = vector.extract_strided_slice %267 {offsets = [0, 0], sizes = [2, 64], strides = [1, 1]} : vector<2x96xf32> to vector<2x64xf32>
    %269 = vector.extract_strided_slice %265 {offsets = [0, 0], sizes = [2, 64], strides = [1, 1]} : vector<2x96xf32> to vector<2x64xf32>
    %270 = arith.addf %268, %269 : vector<2x64xf32>
    %271 = arith.negf %270 : vector<2x64xf32>
    %272 = math.exp %271 : vector<2x64xf32>
    %cst_106 = arith.constant 1.000000e+00 : f32
    %273 = vector.broadcast %cst_106 : f32 to vector<2x64xf32>
    %274 = arith.addf %273, %272 : vector<2x64xf32>
    %275 = arith.divf %273, %274 : vector<2x64xf32>
    %276 = vector.extract_strided_slice %275 {offsets = [0, 0], sizes = [2, 32], strides = [1, 1]} : vector<2x64xf32> to vector<2x32xf32>
    %277 = vector.extract_strided_slice %275 {offsets = [0, 32], sizes = [2, 32], strides = [1, 1]} : vector<2x64xf32> to vector<2x32xf32>
    %278 = vector.extract_strided_slice %267 {offsets = [0, 64], sizes = [2, 32], strides = [1, 1]} : vector<2x96xf32> to vector<2x32xf32>
    %279 = vector.extract_strided_slice %265 {offsets = [0, 64], sizes = [2, 32], strides = [1, 1]} : vector<2x96xf32> to vector<2x32xf32>
    %280 = vector.broadcast %261 : vector<1x32xf32> to vector<2x32xf32>
    %281 = arith.addf %279, %280 : vector<2x32xf32>
    %282 = arith.mulf %276, %281 : vector<2x32xf32>
    %283 = arith.addf %278, %282 : vector<2x32xf32>
    %284 = math.tanh %283 : vector<2x32xf32>
    %cst_107 = arith.constant 1.000000e+00 : f32
    %285 = vector.broadcast %cst_107 : f32 to vector<2x32xf32>
    %286 = arith.subf %285, %277 : vector<2x32xf32>
    %287 = arith.mulf %286, %284 : vector<2x32xf32>
    %288 = arith.mulf %277, %263 : vector<2x32xf32>
    %289 = arith.addf %287, %288 : vector<2x32xf32>
    %c0_108 = arith.constant 0 : index
    %c0_109 = arith.constant 0 : index
    %c0_110 = arith.constant 0 : index
    %290 = vector.load %arg16[%c0_108, %c0_109, %c0_110] : memref<8x2x32xf32, #tpu.memory_space<vmem>>, vector<1x2x32xf32>
    %291 = vector.shape_cast %290 : vector<1x2x32xf32> to vector<2x32xf32>
    %292 = vector.shape_cast %289 : vector<2x32xf32> to vector<1x2x32xf32>
    tpu.vector_store %arg16[%c0_108, %c0_109, %c0_110], %292 {strides = array<i32>} : memref<8x2x32xf32, #tpu.memory_space<vmem>>, vector<1x2x32xf32>,
    %293 = arith.truncf %289 : vector<2x32xf32> to vector<2x32xbf16>
    %cst_111 = arith.constant dense<0.000000e+00> : vector<2x96xf32>
    %294 = tpu.matmul %293, %260, %cst_111 {dimension_numbers = #tpu.dot_dimension_numbers<[1], [0], [0], [1], [0, 0, 1, 1], [], []>} : vector<2x32xbf16>, vector<32x96xbf16>, vector<2x96xf32> -> vector<2x96xf32>
    %c1_112 = arith.constant 1 : index
    %c0_113 = arith.constant 0 : index
    %c0_114 = arith.constant 0 : index
    %295 = vector.load %arg15[%c1_112, %c0_113, %c0_114] : memref<8x2x96xf32, #tpu.memory_space<vmem>>, vector<1x2x96xf32>
    %296 = vector.shape_cast %295 : vector<1x2x96xf32> to vector<2x96xf32>
    %297 = vector.extract_strided_slice %296 {offsets = [0, 0], sizes = [2, 64], strides = [1, 1]} : vector<2x96xf32> to vector<2x64xf32>
    %298 = vector.extract_strided_slice %294 {offsets = [0, 0], sizes = [2, 64], strides = [1, 1]} : vector<2x96xf32> to vector<2x64xf32>
    %299 = arith.addf %297, %298 : vector<2x64xf32>
    %300 = arith.negf %299 : vector<2x64xf32>
    %301 = math.exp %300 : vector<2x64xf32>
    %cst_115 = arith.constant 1.000000e+00 : f32
    %302 = vector.broadcast %cst_115 : f32 to vector<2x64xf32>
    %303 = arith.addf %302, %301 : vector<2x64xf32>
    %304 = arith.divf %302, %303 : vector<2x64xf32>
    %305 = vector.extract_strided_slice %304 {offsets = [0, 0], sizes = [2, 32], strides = [1, 1]} : vector<2x64xf32> to vector<2x32xf32>
    %306 = vector.extract_strided_slice %304 {offsets = [0, 32], sizes = [2, 32], strides = [1, 1]} : vector<2x64xf32> to vector<2x32xf32>
    %307 = vector.extract_strided_slice %296 {offsets = [0, 64], sizes = [2, 32], strides = [1, 1]} : vector<2x96xf32> to vector<2x32xf32>
    %308 = vector.extract_strided_slice %294 {offsets = [0, 64], sizes = [2, 32], strides = [1, 1]} : vector<2x96xf32> to vector<2x32xf32>
    %309 = vector.broadcast %261 : vector<1x32xf32> to vector<2x32xf32>
    %310 = arith.addf %308, %309 : vector<2x32xf32>
    %311 = arith.mulf %305, %310 : vector<2x32xf32>
    %312 = arith.addf %307, %311 : vector<2x32xf32>
    %313 = math.tanh %312 : vector<2x32xf32>
    %cst_116 = arith.constant 1.000000e+00 : f32
    %314 = vector.broadcast %cst_116 : f32 to vector<2x32xf32>
    %315 = arith.subf %314, %306 : vector<2x32xf32>
    %316 = arith.mulf %315, %313 : vector<2x32xf32>
    %317 = arith.mulf %306, %289 : vector<2x32xf32>
    %318 = arith.addf %316, %317 : vector<2x32xf32>
    %c1_117 = arith.constant 1 : index
    %c0_118 = arith.constant 0 : index
    %c0_119 = arith.constant 0 : index
    %319 = vector.load %arg16[%c1_117, %c0_118, %c0_119] : memref<8x2x32xf32, #tpu.memory_space<vmem>>, vector<1x2x32xf32>
    %320 = vector.shape_cast %319 : vector<1x2x32xf32> to vector<2x32xf32>
    %321 = vector.shape_cast %318 : vector<2x32xf32> to vector<1x2x32xf32>
    tpu.vector_store %arg16[%c1_117, %c0_118, %c0_119], %321 {strides = array<i32>} : memref<8x2x32xf32, #tpu.memory_space<vmem>>, vector<1x2x32xf32>,
    %322 = arith.truncf %318 : vector<2x32xf32> to vector<2x32xbf16>
    %cst_120 = arith.constant dense<0.000000e+00> : vector<2x96xf32>
    %323 = tpu.matmul %322, %260, %cst_120 {dimension_numbers = #tpu.dot_dimension_numbers<[1], [0], [0], [1], [0, 0, 1, 1], [], []>} : vector<2x32xbf16>, vector<32x96xbf16>, vector<2x96xf32> -> vector<2x96xf32>
    %c2_121 = arith.constant 2 : index
    %c0_122 = arith.constant 0 : index
    %c0_123 = arith.constant 0 : index
    %324 = vector.load %arg15[%c2_121, %c0_122, %c0_123] : memref<8x2x96xf32, #tpu.memory_space<vmem>>, vector<1x2x96xf32>
    %325 = vector.shape_cast %324 : vector<1x2x96xf32> to vector<2x96xf32>
    %326 = vector.extract_strided_slice %325 {offsets = [0, 0], sizes = [2, 64], strides = [1, 1]} : vector<2x96xf32> to vector<2x64xf32>
    %327 = vector.extract_strided_slice %323 {offsets = [0, 0], sizes = [2, 64], strides = [1, 1]} : vector<2x96xf32> to vector<2x64xf32>
    %328 = arith.addf %326, %327 : vector<2x64xf32>
    %329 = arith.negf %328 : vector<2x64xf32>
    %330 = math.exp %329 : vector<2x64xf32>
    %cst_124 = arith.constant 1.000000e+00 : f32
    %331 = vector.broadcast %cst_124 : f32 to vector<2x64xf32>
    %332 = arith.addf %331, %330 : vector<2x64xf32>
    %333 = arith.divf %331, %332 : vector<2x64xf32>
    %334 = vector.extract_strided_slice %333 {offsets = [0, 0], sizes = [2, 32], strides = [1, 1]} : vector<2x64xf32> to vector<2x32xf32>
    %335 = vector.extract_strided_slice %333 {offsets = [0, 32], sizes = [2, 32], strides = [1, 1]} : vector<2x64xf32> to vector<2x32xf32>
    %336 = vector.extract_strided_slice %325 {offsets = [0, 64], sizes = [2, 32], strides = [1, 1]} : vector<2x96xf32> to vector<2x32xf32>
    %337 = vector.extract_strided_slice %323 {offsets = [0, 64], sizes = [2, 32], strides = [1, 1]} : vector<2x96xf32> to vector<2x32xf32>
    %338 = vector.broadcast %261 : vector<1x32xf32> to vector<2x32xf32>
    %339 = arith.addf %337, %338 : vector<2x32xf32>
    %340 = arith.mulf %334, %339 : vector<2x32xf32>
    %341 = arith.addf %336, %340 : vector<2x32xf32>
    %342 = math.tanh %341 : vector<2x32xf32>
    %cst_125 = arith.constant 1.000000e+00 : f32
    %343 = vector.broadcast %cst_125 : f32 to vector<2x32xf32>
    %344 = arith.subf %343, %335 : vector<2x32xf32>
    %345 = arith.mulf %344, %342 : vector<2x32xf32>
    %346 = arith.mulf %335, %318 : vector<2x32xf32>
    %347 = arith.addf %345, %346 : vector<2x32xf32>
    %c2_126 = arith.constant 2 : index
    %c0_127 = arith.constant 0 : index
    %c0_128 = arith.constant 0 : index
    %348 = vector.load %arg16[%c2_126, %c0_127, %c0_128] : memref<8x2x32xf32, #tpu.memory_space<vmem>>, vector<1x2x32xf32>
    %349 = vector.shape_cast %348 : vector<1x2x32xf32> to vector<2x32xf32>
    %350 = vector.shape_cast %347 : vector<2x32xf32> to vector<1x2x32xf32>
    tpu.vector_store %arg16[%c2_126, %c0_127, %c0_128], %350 {strides = array<i32>} : memref<8x2x32xf32, #tpu.memory_space<vmem>>, vector<1x2x32xf32>,
    %351 = arith.truncf %347 : vector<2x32xf32> to vector<2x32xbf16>
    %cst_129 = arith.constant dense<0.000000e+00> : vector<2x96xf32>
    %352 = tpu.matmul %351, %260, %cst_129 {dimension_numbers = #tpu.dot_dimension_numbers<[1], [0], [0], [1], [0, 0, 1, 1], [], []>} : vector<2x32xbf16>, vector<32x96xbf16>, vector<2x96xf32> -> vector<2x96xf32>
    %c3_130 = arith.constant 3 : index
    %c0_131 = arith.constant 0 : index
    %c0_132 = arith.constant 0 : index
    %353 = vector.load %arg15[%c3_130, %c0_131, %c0_132] : memref<8x2x96xf32, #tpu.memory_space<vmem>>, vector<1x2x96xf32>
    %354 = vector.shape_cast %353 : vector<1x2x96xf32> to vector<2x96xf32>
    %355 = vector.extract_strided_slice %354 {offsets = [0, 0], sizes = [2, 64], strides = [1, 1]} : vector<2x96xf32> to vector<2x64xf32>
    %356 = vector.extract_strided_slice %352 {offsets = [0, 0], sizes = [2, 64], strides = [1, 1]} : vector<2x96xf32> to vector<2x64xf32>
    %357 = arith.addf %355, %356 : vector<2x64xf32>
    %358 = arith.negf %357 : vector<2x64xf32>
    %359 = math.exp %358 : vector<2x64xf32>
    %cst_133 = arith.constant 1.000000e+00 : f32
    %360 = vector.broadcast %cst_133 : f32 to vector<2x64xf32>
    %361 = arith.addf %360, %359 : vector<2x64xf32>
    %362 = arith.divf %360, %361 : vector<2x64xf32>
    %363 = vector.extract_strided_slice %362 {offsets = [0, 0], sizes = [2, 32], strides = [1, 1]} : vector<2x64xf32> to vector<2x32xf32>
    %364 = vector.extract_strided_slice %362 {offsets = [0, 32], sizes = [2, 32], strides = [1, 1]} : vector<2x64xf32> to vector<2x32xf32>
    %365 = vector.extract_strided_slice %354 {offsets = [0, 64], sizes = [2, 32], strides = [1, 1]} : vector<2x96xf32> to vector<2x32xf32>
    %366 = vector.extract_strided_slice %352 {offsets = [0, 64], sizes = [2, 32], strides = [1, 1]} : vector<2x96xf32> to vector<2x32xf32>
    %367 = vector.broadcast %261 : vector<1x32xf32> to vector<2x32xf32>
    %368 = arith.addf %366, %367 : vector<2x32xf32>
    %369 = arith.mulf %363, %368 : vector<2x32xf32>
    %370 = arith.addf %365, %369 : vector<2x32xf32>
    %371 = math.tanh %370 : vector<2x32xf32>
    %cst_134 = arith.constant 1.000000e+00 : f32
    %372 = vector.broadcast %cst_134 : f32 to vector<2x32xf32>
    %373 = arith.subf %372, %364 : vector<2x32xf32>
    %374 = arith.mulf %373, %371 : vector<2x32xf32>
    %375 = arith.mulf %364, %347 : vector<2x32xf32>
    %376 = arith.addf %374, %375 : vector<2x32xf32>
    %c3_135 = arith.constant 3 : index
    %c0_136 = arith.constant 0 : index
    %c0_137 = arith.constant 0 : index
    %377 = vector.load %arg16[%c3_135, %c0_136, %c0_137] : memref<8x2x32xf32, #tpu.memory_space<vmem>>, vector<1x2x32xf32>
    %378 = vector.shape_cast %377 : vector<1x2x32xf32> to vector<2x32xf32>
    %379 = vector.shape_cast %376 : vector<2x32xf32> to vector<1x2x32xf32>
    tpu.vector_store %arg16[%c3_135, %c0_136, %c0_137], %379 {strides = array<i32>} : memref<8x2x32xf32, #tpu.memory_space<vmem>>, vector<1x2x32xf32>,
    %380 = arith.truncf %376 : vector<2x32xf32> to vector<2x32xbf16>
    %cst_138 = arith.constant dense<0.000000e+00> : vector<2x96xf32>
    %381 = tpu.matmul %380, %260, %cst_138 {dimension_numbers = #tpu.dot_dimension_numbers<[1], [0], [0], [1], [0, 0, 1, 1], [], []>} : vector<2x32xbf16>, vector<32x96xbf16>, vector<2x96xf32> -> vector<2x96xf32>
    %c4_139 = arith.constant 4 : index
    %c0_140 = arith.constant 0 : index
    %c0_141 = arith.constant 0 : index
    %382 = vector.load %arg15[%c4_139, %c0_140, %c0_141] : memref<8x2x96xf32, #tpu.memory_space<vmem>>, vector<1x2x96xf32>
    %383 = vector.shape_cast %382 : vector<1x2x96xf32> to vector<2x96xf32>
    %384 = vector.extract_strided_slice %383 {offsets = [0, 0], sizes = [2, 64], strides = [1, 1]} : vector<2x96xf32> to vector<2x64xf32>
    %385 = vector.extract_strided_slice %381 {offsets = [0, 0], sizes = [2, 64], strides = [1, 1]} : vector<2x96xf32> to vector<2x64xf32>
    %386 = arith.addf %384, %385 : vector<2x64xf32>
    %387 = arith.negf %386 : vector<2x64xf32>
    %388 = math.exp %387 : vector<2x64xf32>
    %cst_142 = arith.constant 1.000000e+00 : f32
    %389 = vector.broadcast %cst_142 : f32 to vector<2x64xf32>
    %390 = arith.addf %389, %388 : vector<2x64xf32>
    %391 = arith.divf %389, %390 : vector<2x64xf32>
    %392 = vector.extract_strided_slice %391 {offsets = [0, 0], sizes = [2, 32], strides = [1, 1]} : vector<2x64xf32> to vector<2x32xf32>
    %393 = vector.extract_strided_slice %391 {offsets = [0, 32], sizes = [2, 32], strides = [1, 1]} : vector<2x64xf32> to vector<2x32xf32>
    %394 = vector.extract_strided_slice %383 {offsets = [0, 64], sizes = [2, 32], strides = [1, 1]} : vector<2x96xf32> to vector<2x32xf32>
    %395 = vector.extract_strided_slice %381 {offsets = [0, 64], sizes = [2, 32], strides = [1, 1]} : vector<2x96xf32> to vector<2x32xf32>
    %396 = vector.broadcast %261 : vector<1x32xf32> to vector<2x32xf32>
    %397 = arith.addf %395, %396 : vector<2x32xf32>
    %398 = arith.mulf %392, %397 : vector<2x32xf32>
    %399 = arith.addf %394, %398 : vector<2x32xf32>
    %400 = math.tanh %399 : vector<2x32xf32>
    %cst_143 = arith.constant 1.000000e+00 : f32
    %401 = vector.broadcast %cst_143 : f32 to vector<2x32xf32>
    %402 = arith.subf %401, %393 : vector<2x32xf32>
    %403 = arith.mulf %402, %400 : vector<2x32xf32>
    %404 = arith.mulf %393, %376 : vector<2x32xf32>
    %405 = arith.addf %403, %404 : vector<2x32xf32>
    %c4_144 = arith.constant 4 : index
    %c0_145 = arith.constant 0 : index
    %c0_146 = arith.constant 0 : index
    %406 = vector.load %arg16[%c4_144, %c0_145, %c0_146] : memref<8x2x32xf32, #tpu.memory_space<vmem>>, vector<1x2x32xf32>
    %407 = vector.shape_cast %406 : vector<1x2x32xf32> to vector<2x32xf32>
    %408 = vector.shape_cast %405 : vector<2x32xf32> to vector<1x2x32xf32>
    tpu.vector_store %arg16[%c4_144, %c0_145, %c0_146], %408 {strides = array<i32>} : memref<8x2x32xf32, #tpu.memory_space<vmem>>, vector<1x2x32xf32>,
    %409 = arith.truncf %405 : vector<2x32xf32> to vector<2x32xbf16>
    %cst_147 = arith.constant dense<0.000000e+00> : vector<2x96xf32>
    %410 = tpu.matmul %409, %260, %cst_147 {dimension_numbers = #tpu.dot_dimension_numbers<[1], [0], [0], [1], [0, 0, 1, 1], [], []>} : vector<2x32xbf16>, vector<32x96xbf16>, vector<2x96xf32> -> vector<2x96xf32>
    %c5_148 = arith.constant 5 : index
    %c0_149 = arith.constant 0 : index
    %c0_150 = arith.constant 0 : index
    %411 = vector.load %arg15[%c5_148, %c0_149, %c0_150] : memref<8x2x96xf32, #tpu.memory_space<vmem>>, vector<1x2x96xf32>
    %412 = vector.shape_cast %411 : vector<1x2x96xf32> to vector<2x96xf32>
    %413 = vector.extract_strided_slice %412 {offsets = [0, 0], sizes = [2, 64], strides = [1, 1]} : vector<2x96xf32> to vector<2x64xf32>
    %414 = vector.extract_strided_slice %410 {offsets = [0, 0], sizes = [2, 64], strides = [1, 1]} : vector<2x96xf32> to vector<2x64xf32>
    %415 = arith.addf %413, %414 : vector<2x64xf32>
    %416 = arith.negf %415 : vector<2x64xf32>
    %417 = math.exp %416 : vector<2x64xf32>
    %cst_151 = arith.constant 1.000000e+00 : f32
    %418 = vector.broadcast %cst_151 : f32 to vector<2x64xf32>
    %419 = arith.addf %418, %417 : vector<2x64xf32>
    %420 = arith.divf %418, %419 : vector<2x64xf32>
    %421 = vector.extract_strided_slice %420 {offsets = [0, 0], sizes = [2, 32], strides = [1, 1]} : vector<2x64xf32> to vector<2x32xf32>
    %422 = vector.extract_strided_slice %420 {offsets = [0, 32], sizes = [2, 32], strides = [1, 1]} : vector<2x64xf32> to vector<2x32xf32>
    %423 = vector.extract_strided_slice %412 {offsets = [0, 64], sizes = [2, 32], strides = [1, 1]} : vector<2x96xf32> to vector<2x32xf32>
    %424 = vector.extract_strided_slice %410 {offsets = [0, 64], sizes = [2, 32], strides = [1, 1]} : vector<2x96xf32> to vector<2x32xf32>
    %425 = vector.broadcast %261 : vector<1x32xf32> to vector<2x32xf32>
    %426 = arith.addf %424, %425 : vector<2x32xf32>
    %427 = arith.mulf %421, %426 : vector<2x32xf32>
    %428 = arith.addf %423, %427 : vector<2x32xf32>
    %429 = math.tanh %428 : vector<2x32xf32>
    %cst_152 = arith.constant 1.000000e+00 : f32
    %430 = vector.broadcast %cst_152 : f32 to vector<2x32xf32>
    %431 = arith.subf %430, %422 : vector<2x32xf32>
    %432 = arith.mulf %431, %429 : vector<2x32xf32>
    %433 = arith.mulf %422, %405 : vector<2x32xf32>
    %434 = arith.addf %432, %433 : vector<2x32xf32>
    %c5_153 = arith.constant 5 : index
    %c0_154 = arith.constant 0 : index
    %c0_155 = arith.constant 0 : index
    %435 = vector.load %arg16[%c5_153, %c0_154, %c0_155] : memref<8x2x32xf32, #tpu.memory_space<vmem>>, vector<1x2x32xf32>
    %436 = vector.shape_cast %435 : vector<1x2x32xf32> to vector<2x32xf32>
    %437 = vector.shape_cast %434 : vector<2x32xf32> to vector<1x2x32xf32>
    tpu.vector_store %arg16[%c5_153, %c0_154, %c0_155], %437 {strides = array<i32>} : memref<8x2x32xf32, #tpu.memory_space<vmem>>, vector<1x2x32xf32>,
    %438 = arith.truncf %434 : vector<2x32xf32> to vector<2x32xbf16>
    %cst_156 = arith.constant dense<0.000000e+00> : vector<2x96xf32>
    %439 = tpu.matmul %438, %260, %cst_156 {dimension_numbers = #tpu.dot_dimension_numbers<[1], [0], [0], [1], [0, 0, 1, 1], [], []>} : vector<2x32xbf16>, vector<32x96xbf16>, vector<2x96xf32> -> vector<2x96xf32>
    %c6_157 = arith.constant 6 : index
    %c0_158 = arith.constant 0 : index
    %c0_159 = arith.constant 0 : index
    %440 = vector.load %arg15[%c6_157, %c0_158, %c0_159] : memref<8x2x96xf32, #tpu.memory_space<vmem>>, vector<1x2x96xf32>
    %441 = vector.shape_cast %440 : vector<1x2x96xf32> to vector<2x96xf32>
    %442 = vector.extract_strided_slice %441 {offsets = [0, 0], sizes = [2, 64], strides = [1, 1]} : vector<2x96xf32> to vector<2x64xf32>
    %443 = vector.extract_strided_slice %439 {offsets = [0, 0], sizes = [2, 64], strides = [1, 1]} : vector<2x96xf32> to vector<2x64xf32>
    %444 = arith.addf %442, %443 : vector<2x64xf32>
    %445 = arith.negf %444 : vector<2x64xf32>
    %446 = math.exp %445 : vector<2x64xf32>
    %cst_160 = arith.constant 1.000000e+00 : f32
    %447 = vector.broadcast %cst_160 : f32 to vector<2x64xf32>
    %448 = arith.addf %447, %446 : vector<2x64xf32>
    %449 = arith.divf %447, %448 : vector<2x64xf32>
    %450 = vector.extract_strided_slice %449 {offsets = [0, 0], sizes = [2, 32], strides = [1, 1]} : vector<2x64xf32> to vector<2x32xf32>
    %451 = vector.extract_strided_slice %449 {offsets = [0, 32], sizes = [2, 32], strides = [1, 1]} : vector<2x64xf32> to vector<2x32xf32>
    %452 = vector.extract_strided_slice %441 {offsets = [0, 64], sizes = [2, 32], strides = [1, 1]} : vector<2x96xf32> to vector<2x32xf32>
    %453 = vector.extract_strided_slice %439 {offsets = [0, 64], sizes = [2, 32], strides = [1, 1]} : vector<2x96xf32> to vector<2x32xf32>
    %454 = vector.broadcast %261 : vector<1x32xf32> to vector<2x32xf32>
    %455 = arith.addf %453, %454 : vector<2x32xf32>
    %456 = arith.mulf %450, %455 : vector<2x32xf32>
    %457 = arith.addf %452, %456 : vector<2x32xf32>
    %458 = math.tanh %457 : vector<2x32xf32>
    %cst_161 = arith.constant 1.000000e+00 : f32
    %459 = vector.broadcast %cst_161 : f32 to vector<2x32xf32>
    %460 = arith.subf %459, %451 : vector<2x32xf32>
    %461 = arith.mulf %460, %458 : vector<2x32xf32>
    %462 = arith.mulf %451, %434 : vector<2x32xf32>
    %463 = arith.addf %461, %462 : vector<2x32xf32>
    %c6_162 = arith.constant 6 : index
    %c0_163 = arith.constant 0 : index
    %c0_164 = arith.constant 0 : index
    %464 = vector.load %arg16[%c6_162, %c0_163, %c0_164] : memref<8x2x32xf32, #tpu.memory_space<vmem>>, vector<1x2x32xf32>
    %465 = vector.shape_cast %464 : vector<1x2x32xf32> to vector<2x32xf32>
    %466 = vector.shape_cast %463 : vector<2x32xf32> to vector<1x2x32xf32>
    tpu.vector_store %arg16[%c6_162, %c0_163, %c0_164], %466 {strides = array<i32>} : memref<8x2x32xf32, #tpu.memory_space<vmem>>, vector<1x2x32xf32>,
    %467 = arith.truncf %463 : vector<2x32xf32> to vector<2x32xbf16>
    %cst_165 = arith.constant dense<0.000000e+00> : vector<2x96xf32>
    %468 = tpu.matmul %467, %260, %cst_165 {dimension_numbers = #tpu.dot_dimension_numbers<[1], [0], [0], [1], [0, 0, 1, 1], [], []>} : vector<2x32xbf16>, vector<32x96xbf16>, vector<2x96xf32> -> vector<2x96xf32>
    %c7_166 = arith.constant 7 : index
    %c0_167 = arith.constant 0 : index
    %c0_168 = arith.constant 0 : index
    %469 = vector.load %arg15[%c7_166, %c0_167, %c0_168] : memref<8x2x96xf32, #tpu.memory_space<vmem>>, vector<1x2x96xf32>
    %470 = vector.shape_cast %469 : vector<1x2x96xf32> to vector<2x96xf32>
    %471 = vector.extract_strided_slice %470 {offsets = [0, 0], sizes = [2, 64], strides = [1, 1]} : vector<2x96xf32> to vector<2x64xf32>
    %472 = vector.extract_strided_slice %468 {offsets = [0, 0], sizes = [2, 64], strides = [1, 1]} : vector<2x96xf32> to vector<2x64xf32>
    %473 = arith.addf %471, %472 : vector<2x64xf32>
    %474 = arith.negf %473 : vector<2x64xf32>
    %475 = math.exp %474 : vector<2x64xf32>
    %cst_169 = arith.constant 1.000000e+00 : f32
    %476 = vector.broadcast %cst_169 : f32 to vector<2x64xf32>
    %477 = arith.addf %476, %475 : vector<2x64xf32>
    %478 = arith.divf %476, %477 : vector<2x64xf32>
    %479 = vector.extract_strided_slice %478 {offsets = [0, 0], sizes = [2, 32], strides = [1, 1]} : vector<2x64xf32> to vector<2x32xf32>
    %480 = vector.extract_strided_slice %478 {offsets = [0, 32], sizes = [2, 32], strides = [1, 1]} : vector<2x64xf32> to vector<2x32xf32>
    %481 = vector.extract_strided_slice %470 {offsets = [0, 64], sizes = [2, 32], strides = [1, 1]} : vector<2x96xf32> to vector<2x32xf32>
    %482 = vector.extract_strided_slice %468 {offsets = [0, 64], sizes = [2, 32], strides = [1, 1]} : vector<2x96xf32> to vector<2x32xf32>
    %483 = vector.broadcast %261 : vector<1x32xf32> to vector<2x32xf32>
    %484 = arith.addf %482, %483 : vector<2x32xf32>
    %485 = arith.mulf %479, %484 : vector<2x32xf32>
    %486 = arith.addf %481, %485 : vector<2x32xf32>
    %487 = math.tanh %486 : vector<2x32xf32>
    %cst_170 = arith.constant 1.000000e+00 : f32
    %488 = vector.broadcast %cst_170 : f32 to vector<2x32xf32>
    %489 = arith.subf %488, %480 : vector<2x32xf32>
    %490 = arith.mulf %489, %487 : vector<2x32xf32>
    %491 = arith.mulf %480, %463 : vector<2x32xf32>
    %492 = arith.addf %490, %491 : vector<2x32xf32>
    %c7_171 = arith.constant 7 : index
    %c0_172 = arith.constant 0 : index
    %c0_173 = arith.constant 0 : index
    %493 = vector.load %arg16[%c7_171, %c0_172, %c0_173] : memref<8x2x32xf32, #tpu.memory_space<vmem>>, vector<1x2x32xf32>
    %494 = vector.shape_cast %493 : vector<1x2x32xf32> to vector<2x32xf32>
    %495 = vector.shape_cast %492 : vector<2x32xf32> to vector<1x2x32xf32>
    tpu.vector_store %arg16[%c7_171, %c0_172, %c0_173], %495 {strides = array<i32>} : memref<8x2x32xf32, #tpu.memory_space<vmem>>, vector<1x2x32xf32>,
    %c1_174 = arith.constant 1 : index
    %c0_175 = arith.constant 0 : index
    %c0_176 = arith.constant 0 : index
    %496 = vector.load %arg14[%c1_174, %c0_175, %c0_176] : memref<2x2x32xf32, #tpu.memory_space<vmem>>, vector<1x2x32xf32>
    %497 = vector.shape_cast %496 : vector<1x2x32xf32> to vector<2x32xf32>
    %498 = vector.shape_cast %492 : vector<2x32xf32> to vector<1x2x32xf32>
    tpu.vector_store %arg14[%c1_174, %c0_175, %c0_176], %498 {strides = array<i32>} : memref<2x2x32xf32, #tpu.memory_space<vmem>>, vector<1x2x32xf32>,
    %c0_177 = arith.constant 0 : index
    %c0_178 = arith.constant 0 : index
    %c0_179 = arith.constant 0 : index
    %499 = vector.load %arg16[%c0_177, %c0_178, %c0_179] : memref<8x2x32xf32, #tpu.memory_space<vmem>>, vector<8x2x32xf32>
    %500 = tpu.transpose %499, [1, 0, 2] : vector<8x2x32xf32> -> vector<2x8x32xf32>
    %501 = vector.shape_cast %500 : vector<2x8x32xf32> to vector<16x32xf32>
    %502 = arith.truncf %501 : vector<16x32xf32> to vector<16x32xbf16>
    %c0_180 = arith.constant 0 : index
    %c0_181 = arith.constant 0 : index
    %503 = vector.load %arg11[%c0_180, %c0_181] : memref<32x128xbf16, #tpu.memory_space<vmem>>, vector<32x128xbf16>
    %cst_182 = arith.constant dense<0.000000e+00> : vector<16x128xf32>
    %504 = tpu.matmul %502, %503, %cst_182 {dimension_numbers = #tpu.dot_dimension_numbers<[1], [0], [0], [1], [0, 0, 1, 1], [], []>} : vector<16x32xbf16>, vector<32x128xbf16>, vector<16x128xf32> -> vector<16x128xf32>
    %c0_183 = arith.constant 0 : index
    %c0_184 = arith.constant 0 : index
    %505 = vector.load %arg12[%c0_183, %c0_184] : memref<1x128xf32, #tpu.memory_space<vmem>>, vector<1x128xf32>
    %506 = vector.broadcast %505 : vector<1x128xf32> to vector<16x128xf32>
    %507 = arith.addf %504, %506 : vector<16x128xf32>
    %cst_185 = arith.constant dense<0xFF800000> : vector<16xf32>
    %508 = vector.multi_reduction <maximumf>, %507, %cst_185 [1] : vector<16x128xf32> to vector<16xf32>
    %509 = vector.shape_cast %508 : vector<16xf32> to vector<16x1xf32>
    %510 = vector.broadcast %509 : vector<16x1xf32> to vector<16x128xf32>
    %511 = arith.subf %507, %510 : vector<16x128xf32>
    %512 = math.exp %511 : vector<16x128xf32>
    %cst_186 = arith.constant dense<0.000000e+00> : vector<16xf32>
    %513 = vector.multi_reduction <add>, %512, %cst_186 [1] : vector<16x128xf32> to vector<16xf32>
    %514 = vector.shape_cast %513 : vector<16xf32> to vector<16x1xf32>
    %515 = vector.broadcast %514 : vector<16x1xf32> to vector<16x128xf32>
    %516 = arith.divf %512, %515 : vector<16x128xf32>
    %517 = vector.shape_cast %516 : vector<16x128xf32> to vector<2x8x128xf32>
    %c0_187 = arith.constant 0 : index
    %c0_188 = arith.constant 0 : index
    %c0_189 = arith.constant 0 : index
    %518 = vector.load %arg13[%c0_187, %c0_188, %c0_189] : memref<2x8x128xf32, #tpu.memory_space<vmem>>, vector<2x8x128xf32>
    tpu.vector_store %arg13[%c0_187, %c0_188, %c0_189], %517 {strides = array<i32>} : memref<2x8x128xf32, #tpu.memory_space<vmem>>, vector<2x8x128xf32>,
    return
  }
  func.func @transform_0(%arg0: i32) -> (i32, i32, i32) {
    %c0_i32 = arith.constant 0 : i32
    %c0_i32_0 = arith.constant 0 : i32
    %c0_i32_1 = arith.constant 0 : i32
    return %arg0, %c0_i32, %c0_i32_0 : i32, i32, i32
  }
  func.func @transform_1(%arg0: i32) -> (i32, i32, i32) {
    %c0_i32 = arith.constant 0 : i32
    %c0_i32_0 = arith.constant 0 : i32
    %c0_i32_1 = arith.constant 0 : i32
    return %c0_i32, %arg0, %c0_i32_0 : i32, i32, i32
  }
  func.func @transform_2(%arg0: i32) -> (i32, i32) {
    %c0_i32 = arith.constant 0 : i32
    %c0_i32_0 = arith.constant 0 : i32
    %c0_i32_1 = arith.constant 0 : i32
    return %c0_i32, %c0_i32_0 : i32, i32
  }
  func.func @transform_3(%arg0: i32) -> (i32, i32) {
    %c0_i32 = arith.constant 0 : i32
    %c0_i32_0 = arith.constant 0 : i32
    %c0_i32_1 = arith.constant 0 : i32
    return %c0_i32, %c0_i32_0 : i32, i32
  }
  func.func @transform_4(%arg0: i32) -> (i32, i32) {
    %c0_i32 = arith.constant 0 : i32
    %c0_i32_0 = arith.constant 0 : i32
    %c0_i32_1 = arith.constant 0 : i32
    return %c0_i32, %c0_i32_0 : i32, i32
  }
  func.func @transform_5(%arg0: i32) -> (i32, i32) {
    %c0_i32 = arith.constant 0 : i32
    %c0_i32_0 = arith.constant 0 : i32
    %c0_i32_1 = arith.constant 0 : i32
    return %c0_i32, %c0_i32_0 : i32, i32
  }
  func.func @transform_6(%arg0: i32) -> (i32, i32) {
    %c0_i32 = arith.constant 0 : i32
    %c0_i32_0 = arith.constant 0 : i32
    %c0_i32_1 = arith.constant 0 : i32
    return %c0_i32, %c0_i32_0 : i32, i32
  }
  func.func @transform_7(%arg0: i32) -> (i32, i32) {
    %c0_i32 = arith.constant 0 : i32
    %c0_i32_0 = arith.constant 0 : i32
    %c0_i32_1 = arith.constant 0 : i32
    return %c0_i32, %c0_i32_0 : i32, i32
  }
  func.func @transform_8(%arg0: i32) -> (i32, i32) {
    %c0_i32 = arith.constant 0 : i32
    %c0_i32_0 = arith.constant 0 : i32
    %c0_i32_1 = arith.constant 0 : i32
    return %c0_i32, %c0_i32_0 : i32, i32
  }
  func.func @transform_9(%arg0: i32) -> (i32, i32) {
    %c0_i32 = arith.constant 0 : i32
    %c0_i32_0 = arith.constant 0 : i32
    %c0_i32_1 = arith.constant 0 : i32
    return %c0_i32, %c0_i32_0 : i32, i32
  }
  func.func @transform_10(%arg0: i32) -> (i32, i32) {
    %c0_i32 = arith.constant 0 : i32
    %c0_i32_0 = arith.constant 0 : i32
    %c0_i32_1 = arith.constant 0 : i32
    return %c0_i32, %c0_i32_0 : i32, i32
  }
  func.func @transform_11(%arg0: i32) -> (i32, i32) {
    %c0_i32 = arith.constant 0 : i32
    %c0_i32_0 = arith.constant 0 : i32
    %c0_i32_1 = arith.constant 0 : i32
    return %c0_i32, %c0_i32_0 : i32, i32
  }
  func.func @transform_12(%arg0: i32) -> (i32, i32, i32) {
    %c0_i32 = arith.constant 0 : i32
    %c0_i32_0 = arith.constant 0 : i32
    %c0_i32_1 = arith.constant 0 : i32
    return %arg0, %c0_i32, %c0_i32_0 : i32, i32, i32
  }
  func.func @transform_13(%arg0: i32) -> (i32, i32, i32) {
    %c0_i32 = arith.constant 0 : i32
    %c0_i32_0 = arith.constant 0 : i32
    %c0_i32_1 = arith.constant 0 : i32
    return %c0_i32, %arg0, %c0_i32_0 : i32, i32, i32
  }
}

</mosaic_0001>

<bundles_post_ra>
// kernel: generator_forward.1
= control target key start
LH: loop header
LB: loop body
LE: loop exit
PB: predicated region body
PF: predicated region fallthrough
CT: control target
= control target key end

     0   :  { %19 = vsyncpa [#allocation5], 0  ;;  %s2618_s0 = inlined_call_operand.hbm [shape: f32[2,8,32], index: 0, kind: input, shape index: {}]   ;;  %s2619_s1 = inlined_call_operand.hbm [shape: f32[2,2,32], index: 1, kind: input, shape index: {}]   ;;  %s2620_s2 = inlined_call_operand.hbm [shape: bf16[32,96], index: 2, kind: input, shape index: {}]   ;;  %s2621_s3 = inlined_call_operand.hbm [shape: bf16[32,96], index: 3, kind: input, shape index: {}]   ;;  %s2622_s4 = inlined_call_operand.vmem [shape: f32[1,96], index: 4, kind: input, shape index: {}]   ;;  %s2623_s5 = inlined_call_operand.vmem [shape: f32[1,32], index: 5, kind: input, shape index: {}]   ;;  %s2624_s6 = inlined_call_operand.hbm [shape: bf16[32,96], index: 6, kind: input, shape index: {}]   ;;  %s2625_s7 = inlined_call_operand.hbm [shape: bf16[32,96], index: 7, kind: input, shape index: {}]   ;;  %s2626_s8 = inlined_call_operand.vmem [shape: f32[1,96], index: 8, kind: input, shape index: {}]   ;;  %s2627_s9 = inlined_call_operand.vmem [shape: f32[1,32], index: 9, kind: input, shape index: {}]   ;;  %s2628_s10 = inlined_call_operand.hbm [shape: bf16[32,128], index: 10, kind: input, shape index: {}]   ;;  %s2629_s11 = inlined_call_operand.hbm [shape: f32[1,128], index: 11, kind: input, shape index: {}]   ;;  %s2630_s12 = inlined_call_operand.hbm [shape: f32[2,8,128], index: 12, kind: output, shape index: {0}]   ;;  %s2631_s13 = inlined_call_operand.hbm [shape: f32[2,2,32], index: 13, kind: output, shape index: {1}]  }
   0x1   :  { %20 = vsyncpa [#allocation8], 0 }
   0x2   :  { %21 = vsyncpa [#allocation11], 0 }
   0x3   :  { %22 = vsyncpa [#allocation14], 0 }
   0x4   :  { %23 = vsyncpa [#allocation17], 0 }
   0x5   :  { %24 = vsyncpa [#allocation6], 0  ;;  %s43_s27 = sshll.u32 %s2619_s1, 4  ;;  %s44_s27 = int_to_ptr.hbm [resolvable:$true] %s43_s27 }
   0x6   :  { %25 = vsyncpa [#allocation20], 0  ;;  %s2171_s28 = smov [#allocation7]   ;;  %s2172_s30 = smov 32  }
   0x7   :  { %s45_s29 = sshll.u32 %s2171_s28, 4  ;;  %s2173_s14 = smov 2   ;;  %s46_s29 = int_to_ptr.vmem [resolvable:$true] %s45_s29 }
   0x8   :  { %51 = dma.hbm_to_vmem [thread:$0]  %s44_s27, 64, %s46_s29, [#allocation8], %s2172_s30, %s2172_s30, %s2173_s14  }
   0x9   :  { %s69_s17 = sshll.u32 %s2621_s3, 4  ;;  %s2174_s18 = smov [#allocation10]   ;;  %s70_s17 = int_to_ptr.hbm [resolvable:$true] %s69_s17 }
   0xa   :  { %s71_s19 = sshll.u32 %s2174_s18, 4  ;;  %s99_s21 = sshll.u32 %s2625_s7, 4  ;;  %s72_s19 = int_to_ptr.vmem [resolvable:$true] %s71_s19  ;;  %s100_s21 = int_to_ptr.hbm [resolvable:$true] %s99_s21 }
   0xb   :  { %s2175_s22 = smov 64   ;;  %s2176_s23 = smov 4  }
   0xc   :  { %77 = dma.hbm_to_vmem [thread:$0]  %s70_s17, 256, %s72_s19, [#allocation11], %s2175_s22, %s2175_s22, %s2176_s23  }
   0xd   :  { %s30_s26 = sshll.u32 %s2618_s0, 4  ;;  %s2177_s3 = smov [#allocation13]   ;;  %s31_s26 = int_to_ptr.hbm [resolvable:$true] %s30_s26 }
   0xe   :  { %s101_s27 = sshll.u32 %s2177_s3, 4  ;;  %s2178_s7 = smov [#allocation4]   ;;  %s102_s27 = int_to_ptr.vmem [resolvable:$true] %s101_s27 }
   0xf   :  { %107 = dma.hbm_to_vmem [thread:$0]  %s100_s21, 256, %s102_s27, [#allocation14], %s2175_s22, %s2175_s22, %s2176_s23  }
  0x10   :  { %s32_s28 = sshll.u32 %s2178_s7, 4  ;;  %s2179_s29 = smov 128   ;;  %s33_s28 = int_to_ptr.vmem [resolvable:$true] %s32_s28 }
  0x11   :  { %s2180_s15 = smov 8   ;;  %s56_s0 = sshll.u32 %s2620_s2, 4  ;;  %s57_s0 = int_to_ptr.hbm [resolvable:$true] %s56_s0 }
  0x12   :  { %38 = dma.hbm_to_vmem [thread:$0]  %s31_s26, 256, %s33_s28, [#allocation5], %s2179_s29, %s2179_s29, %s2180_s15  }
  0x13   :  { %s2181_s18 = smov [#allocation9]   ;;  %s86_s21 = sshll.u32 %s2624_s6, 4  ;;  %s87_s21 = int_to_ptr.hbm [resolvable:$true] %s86_s21 }
  0x14   :  { %s58_s19 = sshll.u32 %s2181_s18, 4  ;;  %s2182_s24 = smov [#allocation12]   ;;  %s59_s19 = int_to_ptr.vmem [resolvable:$true] %s58_s19 }
  0x15   :  { %64 = dma.hbm_to_vmem [thread:$0]  %s57_s0, 256, %s59_s19, [#allocation8], %s2175_s22, %s2175_s22, %s2176_s23  }
  0x16   :  { %s88_s25 = sshll.u32 %s2182_s24, 4  ;;  %s116_s27 = sshll.u32 %s2628_s10, 4  ;;  %s89_s25 = int_to_ptr.vmem [resolvable:$true] %s88_s25  ;;  %s117_s27 = int_to_ptr.hbm [resolvable:$true] %s116_s27 }
  0x17   :  { %94 = dma.hbm_to_vmem [thread:$0]  %s87_s21, 256, %s89_s25, [#allocation11], %s2175_s22, %s2175_s22, %s2176_s23  }
  0x18   :  { %s130_s6 = sshll.u32 %s2629_s11, 4  ;;  %s2183_s28 = smov [#allocation15]   ;;  %s131_s6 = int_to_ptr.hbm [resolvable:$true] %s130_s6 }
  0x19   :  { %s118_s16 = sshll.u32 %s2183_s28, 4  ;;  %s2184_s17 = smov [#allocation16]   ;;  %s119_s16 = int_to_ptr.vmem [resolvable:$true] %s118_s16 }
  0x1a   :  { %124 = dma.hbm_to_vmem [thread:$0]  %s117_s27, 256, %s119_s16, [#allocation14], %s2175_s22, %s2175_s22, %s2176_s23  }
  0x1b   :  { %s132_s10 = sshll.u32 %s2184_s17, 4  ;;  %s133_s10 = int_to_ptr.vmem [resolvable:$true] %s132_s10 }
  0x1c   :  { %135 = dma.hbm_to_vmem [thread:$0]  %s131_s6, 16, %s133_s10, [#allocation17]  }
  0x1d   :  { %2157 = dma.done.wait [#allocation5], 256  }
  0x1e   :  { %2158 = vsyncadd [#allocation5], 4294967040 }
  0x1f   :  { %2159 = dma.done.wait [#allocation8], 320  }
  0x20   :  { %2160 = vsyncadd [#allocation8], 4294966976 }
  0x21   :  { %2161 = dma.done.wait [#allocation11], 512  }
  0x22   :  { %2162 = vsyncadd [#allocation11], 4294966784 }
  0x23   :  { %2163 = dma.done.wait [#allocation14], 512  }
  0x24   :  { %2164 = vsyncadd [#allocation14], 4294966784 }
  0x25   :  { %2165 = dma.done.wait [#allocation17], 16  }
  0x26   :  { %2166 = vsyncadd [#allocation17], 4294967280  ;;  %v2185_v0 = vmov 1983009808   ;;  %v2307_v3 = vld [vmem:[#allocation10 + $0x8] sm:$0xff]  ;;  %v2309_v4 = vld [vmem:[#allocation10] sm:$0xff] }
  0x27   :  { %v175_v1 = vunpack.c.l.s4 %v2185_v0  ;;  %v318_v5 = vld [vmem:[#allocation7] sm:$0x3]  ;;  %v2186_v6 = vmov 1934713408   ;;  %v1780_v8 = vld [vmem:[#allocation9 + $0x8] sm:$0xff]  ;;  %341 = vmatpush.bf16.msra.mxu1 %v2307_v3  ;;  %v1779_v10 = vld [vmem:[#allocation9] sm:$0xff]  ;;  %417 = vmatpush.bf16.msra.mxu2 %v2307_v3 }
  0x28   :  { %v197_v7 = vunpack.c.l.s4 %v2186_v6  ;;  %v1808_v9 = vld [vmem:[%s2623_s5] ss:$0 sm:$0xff]  ;;  %393 = vrot.lane.b32.xlu2 %v318_v5, %s2172_s30  ;;  %v169_v11 = vld [vmem:[#allocation4] sm:$0xff]  ;;  %v170_v12 = vld [vmem:[#allocation4 + $0x8] sm:$0xff]  ;;  %vm172_vm0 = vcmask 1047556   ;;  %282 = vmatpush.bf16.msra.mxu0 %v1780_v8  ;;  %v319_v17 = vpack.c.bf16 %v318_v5, %v318_v5  ;;  %vm272_vm1 = vcmask 261120  }
  0x29   :  { %v2305_v2 = vunpack.c.0.s8 %v175_v1  ;;  %371 = vrot.lane.b32.xlu0 %v1808_v9, %s2175_s22  ;;  %v171_v13 = vrot.slane %v169_v11, 4  ;;  %v182_v15 = vrot.slane %v170_v12, 4  ;;  %485 = vmatpush.bf16.msra.mxu3 %v2307_v3  ;;  %v1809_v50 = vld [vmem:[%s2622_s4] ss:$0 sm:$0xff]  ;;  %vm304_vm2 = vcmask 779264   ;;  %s2187_s4 = smov 96  }
  0x2a   :  { %v2320_v18 = vunpack.c.0.s8 %v197_v7  ;;  %s1682_s24 = sshll.u32 %s2631_s13, 4  ;;  %s2189_s13 = smov [#allocation18]   ;;  %s1683_s24 = int_to_ptr.hbm [resolvable:$true] %s1682_s24 }
  0x2b   :  { %v177_v14 = vperm.slane %v169_v11, %v2305_v2  ;;  %v187_v16 = vperm.slane %v170_v12, %v2305_v2  ;;  %v173_v19 = vsel %vm172_vm0, 0.0, %v171_v13  ;;  %v183_v20 = vsel %vm172_vm0, 0.0, %v182_v15  ;;  %342 = vmatpush.bf16.msra.mxu1 %v2309_v4  ;;  %418 = vmatpush.bf16.msra.mxu2 %v2309_v4  ;;  %s1669_s26 = sshll.u32 %s2630_s12, 4  ;;  %s1670_s26 = int_to_ptr.hbm [resolvable:$true] %s1669_s26 }
  0x2c   :  { %v181_v23 = vperm.slane %v173_v19, %v2305_v2  ;;  %v191_v24 = vperm.slane %v183_v20, %v2305_v2  ;;  %283 = vmatpush.bf16.msra.mxu0 %v1779_v10 }
  0x2d   :  { %v192_v21 = vrot.slane %v187_v16, 4  ;;  %v194_v22 = vrot.slane %v177_v14, 4  ;;  %486 = vmatpush.bf16.msra.mxu3 %v2309_v4 }
  0x2e   :  { %v204_v29 = vrot.slane %v191_v24, 4  ;;  %v206_v30 = vrot.slane %v181_v23, 4  ;;  %1721 = vmatmul.msk.bf16.vlgmr.msra.gmra.mxu1 %vm272_vm1, %v319_v17 }
  0x2f   :  { %v193_v25 = vsel %vm172_vm0, %v192_v21, %v177_v14  ;;  %v195_v26 = vsel %vm172_vm0, %v187_v16, %v194_v22  ;;  %621 = vmatpush.bf16.msrb.mxu1 %v2307_v3  ;;  %689 = vmatpush.bf16.msrb.mxu2 %v2307_v3 }
  0x30   :  { %v199_v27 = vperm.slane %v193_v25, %v2320_v18  ;;  %v203_v28 = vperm.slane %v195_v26, %v2320_v18  ;;  %553 = vmatpush.bf16.msrb.mxu0 %v2307_v3  ;;  %v205_v31 = vsel %vm172_vm0, %v204_v29, %v181_v23  ;;  %v207_v32 = vsel %vm172_vm0, %v191_v24, %v206_v30 }
  0x31   :  { %757 = vmatpush.bf16.msrb.mxu3 %v2307_v3  ;;  %v211_v35 = vperm.slane %v205_v31, %v2320_v18  ;;  %v215_v36 = vperm.slane %v207_v32, %v2320_v18 }
  0x32   :  { %v216_v33 = vrot.slane %v199_v27, 4  ;;  %v218_v34 = vrot.slane %v203_v28, 4  ;;  %232 = vst [vmem:[#allocation1] ss:$4 sm:$0xff] %v199_v27 }
  0x33   :  { %236 = vst [vmem:[#allocation1 + $0x2] ss:$4 sm:$0xff] %v203_v28  ;;  %622 = vmatpush.bf16.msrb.mxu1 %v2309_v4  ;;  %v220_v39 = vrot.slane %v211_v35, 4  ;;  %v222_v40 = vrot.slane %v215_v36, 4  ;;  %690 = vmatpush.bf16.msrb.mxu2 %v2309_v4 }
  0x34   :  { %v217_v37 = vsel %vm172_vm0, 0.0, %v216_v33  ;;  %v219_v38 = vsel %vm172_vm0, 0.0, %v218_v34  ;;  %554 = vmatpush.bf16.msrb.mxu0 %v2309_v4  ;;  %240 = vst [vmem:[#allocation1 + $0x20] ss:$4 sm:$0xff] %v211_v35 }
  0x35   :  { %234 = vst [vmem:[#allocation1 + $0x1] ss:$4 sm:$0xff] %v217_v37  ;;  %758 = vmatpush.bf16.msrb.mxu3 %v2309_v4  ;;  %v221_v41 = vsel %vm172_vm0, 0.0, %v220_v39  ;;  %v223_v42 = vsel %vm172_vm0, 0.0, %v222_v40 }
  0x36   :  { %238 = vst [vmem:[#allocation1 + $0x3] ss:$4 sm:$0xff] %v219_v38 }
  0x37   :  { %242 = vst [vmem:[#allocation1 + $0x21] ss:$4 sm:$0xff] %v221_v41 }
  0x38   :  { %244 = vst [vmem:[#allocation1 + $0x22] ss:$4 sm:$0xff] %v215_v36 }
  0x39   :  { %246 = vst [vmem:[#allocation1 + $0x23] ss:$4 sm:$0xff] %v223_v42 }
  0x3d   :  { %v247_v43 = vld.sshfl [vmem:[#allocation1] sm:$0xff pattern:$0x73625140] }
  0x40   :  { %v248_v44 = vld.sshfl [vmem:[#allocation1 + $0x20] sm:$0xff pattern:$0x73625140] }
  0x41   :  { %v251_v45 = vpack.c.bf16 %v248_v44, %v247_v43 }
  0x43   :  { %1712 = vmatmul.msk.bf16.vlgmr.msra.gmra.mxu0 %vm272_vm1, %v251_v45 }
  0x44   :  { %825 = vmatpush.bf16.msra.mxu0 %v2307_v3 }
  0x48   :  { %826 = vmatpush.bf16.msra.mxu0 %v2309_v4 }
  0x82   :  { %v394_v19 = vpop.permute.xlu2 %393 }
  0x9b   :  { %v2354_v46 = vpop.permute.xlu0 %371 }
  0xab   :  { %v344_v47 = vpop.f32.mrf.mxu1 }
  0xac   :  { %v374_v48 = vadd.f32 %v2354_v46, %v344_v47 }
  0xae   :  { %376 = vrot.lane.b32.xlu0 %v374_v48, %s2175_s22 }
  0xb3   :  { %v346_v49 = vpop.f32.mrf.mxu1 }
  0xc0   :  { %v285_v51 = vpop.f32.mrf.mxu0 }
  0xc1   :  { %v286_v52 = vadd.f32 %v1809_v50, %v285_v51 }
  0xc3   :  { %v292_v53 = vrot.slane %v286_v52, 2  ;;  %v293_v54 = vrot.slane %v286_v52, 4  ;;  %v294_v55 = vrot.slane %v286_v52, 6  ;;  %305 = vst.msk [vmem:[#allocation2] sm:$0x3] %vm304_vm2, %v286_v52 }
  0xc5   :  { %306 = vst.msk [vmem:[#allocation2 + $0x2] sm:$0x3] %vm304_vm2, %v292_v53 }
  0xc6   :  { %307 = vst.msk [vmem:[#allocation2 + $0x4] sm:$0x3] %vm304_vm2, %v293_v54 }
  0xc7   :  { %308 = vst.msk [vmem:[#allocation2 + $0x6] sm:$0x3] %vm304_vm2, %v294_v55 }
  0xc8   :  { %v287_v56 = vpop.f32.mrf.mxu0 }
  0xc9   :  { %v288_v57 = vadd.f32 %v1809_v50, %v287_v56 }
  0xca   :  { %v348_v61 = vld [vmem:[#allocation2] sm:$0x3] }
  0xcb   :  { %v295_v58 = vrot.slane %v288_v57, 2  ;;  %v296_v59 = vrot.slane %v288_v57, 4  ;;  %v297_v60 = vrot.slane %v288_v57, 6  ;;  %309 = vst.msk [vmem:[#allocation2 + $0x8] sm:$0x3] %vm304_vm2, %v288_v57  ;;  %v349_v62 = vadd.f32 %v348_v61, %v344_v47 }
  0xcc   :  { %v425_v30 = vld [vmem:[#allocation2 + $0x2] sm:$0x3] }
  0xcd   :  { %310 = vst.msk [vmem:[#allocation2 + $0xa] sm:$0x3] %vm304_vm2, %v295_v58  ;;  %v1722_v63 = vmul.f32 -1.442695, %v349_v62 }
  0xce   :  { %311 = vst.msk [vmem:[#allocation2 + $0xc] sm:$0x3] %vm304_vm2, %v296_v59 }
  0xcf   :  { %312 = vst.msk [vmem:[#allocation2 + $0xe] sm:$0x3] %vm304_vm2, %v297_v60  ;;  %1813 = vpow2.f32 %v1722_v63 }
  0xd5   :  { %v1814_v0 = vpop.eup %1813 }
  0xd6   :  { %v353_v1 = vadd.f32 1.0, %v1814_v0 }
  0xd8   :  { %1815 = vrcp.f32 %v353_v1  ;;  %v365_v8 = vand.u32 2147483648, %v353_v1  ;;  %vm359_vm4 = vweird.f32 %v353_v1  ;;  %v363_v9 = vand.u32 2147483647, %v353_v1 }
  0xda   :  { %v366_v11 = vor.u32 1.1754944e-38, %v365_v8  ;;  %vm364_vm6 = vcmp.eq.f32.partialorder %v363_v9, 8.507059e+37 }
  0xde   :  { %v1816_v3 = vpop.eup %1815 }
  0xdf   :  { %v355_v4 = vmul.f32 %v1816_v3, %v353_v1  ;;  %vm360_vm3 = vweird.f32 %v1816_v3 }
  0xe0   :  { %vm361_vm5 = vmor %vm359_vm4, %vm360_vm3 }
  0xe1   :  { %v356_v5 = vsub.f32 1.0, %v355_v4 }
  0xe3   :  { %v357_v6 = vmul.f32 %v1816_v3, %v356_v5 }
  0xe5   :  { %v358_v7 = vadd.f32 %v1816_v3, %v357_v6 }
  0xe7   :  { %v362_v10 = vsel %vm361_vm5, %v1816_v3, %v358_v7 }
  0xe8   :  { %v367_v12 = vsel %vm364_vm6, %v366_v11, %v362_v10 }
  0xe9   :  { %v386_v20 = vsub.f32 1.0, %v367_v12  ;;  %v396_v22 = vmul.f32 %v394_v19, %v367_v12 }
 0x120   :  { %v377_v13 = vpop.permute.xlu0 %376 }
 0x121   :  { %v379_v14 = vmul.f32 %v377_v13, %v367_v12 }
 0x123   :  { %381 = vrot.lane.b32.xlu1 %v379_v14, %s2175_s22 }
 0x195   :  { %v382_v15 = vpop.permute.xlu1 %381 }
 0x196   :  { %v384_v16 = vadd.f32 %v382_v15, %v348_v61  ;;  %v493_v61 = vld [vmem:[#allocation2 + $0x4] sm:$0x3] }
 0x198   :  { %1817 = vtanh.f32 %v384_v16 }
 0x19e   :  { %v1818_v17 = vpop.eup %1817 }
 0x19f   :  { %388 = vrot.lane.b32.xlu1 %v1818_v17, %s2187_s4 }
 0x211   :  { %v389_v21 = vpop.permute.xlu1 %388 }
 0x212   :  { %v391_v23 = vmul.f32 %v389_v21, %v386_v20 }
 0x214   :  { %v2371_v24 = vadd.f32 %v396_v22, %v391_v23 }
 0x216   :  { %v404_v25 = vpack.c.bf16 %v2371_v24, %v2371_v24 }
 0x218   :  { %406 = vrot.lane.b32.xlu2 %v404_v25, %s2187_s4 }
 0x272   :  { %v407_v26 = vpop.permute.xlu2 %406 }
 0x273   :  { %1723 = vmatmul.msk.bf16.vlgmr.msra.gmra.mxu2 %vm272_vm1, %v407_v26 }
 0x2f6   :  { %v420_v27 = vpop.f32.mrf.mxu2 }
 0x2f7   :  { %v446_v28 = vadd.f32 %v420_v27, %v2354_v46  ;;  %v426_v31 = vadd.f32 %v425_v30, %v420_v27 }
 0x2f9   :  { %448 = vrot.lane.b32.xlu0 %v446_v28, %s2175_s22  ;;  %v1724_v32 = vmul.f32 -1.442695, %v426_v31 }
 0x2fb   :  { %1819 = vpow2.f32 %v1724_v32 }
 0x2fe   :  { %v422_v29 = vpop.f32.mrf.mxu2 }
 0x301   :  { %v1820_v33 = vpop.eup %1819 }
 0x302   :  { %v430_v34 = vadd.f32 1.0, %v1820_v33 }
 0x304   :  { %1821 = vrcp.f32 %v430_v34  ;;  %v442_v40 = vand.u32 2147483648, %v430_v34  ;;  %vm436_vm8 = vweird.f32 %v430_v34  ;;  %v440_v41 = vand.u32 2147483647, %v430_v34 }
 0x306   :  { %v443_v43 = vor.u32 1.1754944e-38, %v442_v40  ;;  %vm441_vm10 = vcmp.eq.f32.partialorder %v440_v41, 8.507059e+37 }
 0x30a   :  { %v1822_v35 = vpop.eup %1821 }
 0x30b   :  { %v432_v36 = vmul.f32 %v1822_v35, %v430_v34  ;;  %vm437_vm7 = vweird.f32 %v1822_v35 }
 0x30c   :  { %vm438_vm9 = vmor %vm436_vm8, %vm437_vm7 }
 0x30d   :  { %v433_v37 = vsub.f32 1.0, %v432_v36 }
 0x30f   :  { %v434_v38 = vmul.f32 %v1822_v35, %v433_v37 }
 0x311   :  { %v435_v39 = vadd.f32 %v1822_v35, %v434_v38 }
 0x313   :  { %v439_v42 = vsel %vm438_vm9, %v1822_v35, %v435_v39 }
 0x314   :  { %v444_v45 = vsel %vm441_vm10, %v443_v43, %v439_v42 }
 0x315   :  { %v458_v51 = vsub.f32 1.0, %v444_v45  ;;  %v464_v53 = vmul.f32 %v444_v45, %v2371_v24 }
 0x36b   :  { %v449_v44 = vpop.permute.xlu0 %448 }
 0x36c   :  { %v451_v47 = vmul.f32 %v449_v44, %v444_v45 }
 0x36e   :  { %453 = vrot.lane.b32.xlu1 %v451_v47, %s2175_s22 }
 0x3e0   :  { %v454_v48 = vpop.permute.xlu1 %453 }
 0x3e1   :  { %v456_v49 = vadd.f32 %v454_v48, %v425_v30  ;;  %v561_v30 = vld [vmem:[#allocation2 + $0x6] sm:$0x3] }
 0x3e3   :  { %1823 = vtanh.f32 %v456_v49 }
 0x3e9   :  { %v1824_v50 = vpop.eup %1823 }
 0x3ea   :  { %460 = vrot.lane.b32.xlu2 %v1824_v50, %s2187_s4 }
 0x444   :  { %v461_v52 = vpop.permute.xlu2 %460 }
 0x445   :  { %v463_v54 = vmul.f32 %v461_v52, %v458_v51 }
 0x447   :  { %v2382_v55 = vadd.f32 %v464_v53, %v463_v54 }
 0x449   :  { %v472_v56 = vpack.c.bf16 %v2382_v55, %v2382_v55 }
 0x44b   :  { %474 = vrot.lane.b32.xlu0 %v472_v56, %s2187_s4 }
 0x4bd   :  { %v475_v57 = vpop.permute.xlu0 %474 }
 0x4be   :  { %1725 = vmatmul.msk.bf16.vlgmr.msra.gmra.mxu3 %vm272_vm1, %v475_v57 }
 0x541   :  { %v488_v58 = vpop.f32.mrf.mxu3 }
 0x542   :  { %v514_v59 = vadd.f32 %v488_v58, %v2354_v46  ;;  %v494_v62 = vadd.f32 %v493_v61, %v488_v58 }
 0x544   :  { %516 = vrot.lane.b32.xlu1 %v514_v59, %s2175_s22  ;;  %v1726_v63 = vmul.f32 -1.442695, %v494_v62  ;;  %v629_v62 = vld [vmem:[#allocation2 + $0x8] sm:$0x3] }
 0x546   :  { %1825 = vpow2.f32 %v1726_v63 }
 0x549   :  { %v490_v60 = vpop.f32.mrf.mxu3 }
 0x54c   :  { %v1826_v0 = vpop.eup %1825 }
 0x54d   :  { %v498_v1 = vadd.f32 1.0, %v1826_v0 }
 0x54f   :  { %1827 = vrcp.f32 %v498_v1  ;;  %v510_v8 = vand.u32 2147483648, %v498_v1  ;;  %vm504_vm12 = vweird.f32 %v498_v1  ;;  %v508_v9 = vand.u32 2147483647, %v498_v1 }
 0x551   :  { %v511_v11 = vor.u32 1.1754944e-38, %v510_v8  ;;  %vm509_vm14 = vcmp.eq.f32.partialorder %v508_v9, 8.507059e+37 }
 0x555   :  { %v1828_v3 = vpop.eup %1827 }
 0x556   :  { %v500_v4 = vmul.f32 %v1828_v3, %v498_v1  ;;  %vm505_vm11 = vweird.f32 %v1828_v3 }
 0x557   :  { %vm506_vm13 = vmor %vm504_vm12, %vm505_vm11 }
 0x558   :  { %v501_v5 = vsub.f32 1.0, %v500_v4 }
 0x55a   :  { %v502_v6 = vmul.f32 %v1828_v3, %v501_v5 }
 0x55c   :  { %v503_v7 = vadd.f32 %v1828_v3, %v502_v6 }
 0x55e   :  { %v507_v10 = vsel %vm506_vm13, %v1828_v3, %v503_v7 }
 0x55f   :  { %v512_v13 = vsel %vm509_vm14, %v511_v11, %v507_v10 }
 0x560   :  { %v526_v19 = vsub.f32 1.0, %v512_v13  ;;  %v532_v21 = vmul.f32 %v512_v13, %v2382_v55 }
 0x5b6   :  { %v517_v12 = vpop.permute.xlu1 %516 }
 0x5b7   :  { %v519_v14 = vmul.f32 %v517_v12, %v512_v13 }
 0x5b9   :  { %521 = vrot.lane.b32.xlu2 %v519_v14, %s2175_s22 }
 0x613   :  { %v522_v15 = vpop.permute.xlu2 %521 }
 0x614   :  { %v524_v16 = vadd.f32 %v522_v15, %v493_v61 }
 0x616   :  { %1829 = vtanh.f32 %v524_v16 }
 0x61c   :  { %v1830_v17 = vpop.eup %1829 }
 0x61d   :  { %528 = vrot.lane.b32.xlu0 %v1830_v17, %s2187_s4 }
 0x68f   :  { %v529_v20 = vpop.permute.xlu0 %528 }
 0x690   :  { %v531_v22 = vmul.f32 %v529_v20, %v526_v19 }
 0x692   :  { %v2393_v23 = vadd.f32 %v532_v21, %v531_v22 }
 0x694   :  { %v540_v25 = vpack.c.bf16 %v2393_v23, %v2393_v23 }
 0x696   :  { %542 = vrot.lane.b32.xlu1 %v540_v25, %s2187_s4 }
 0x708   :  { %v543_v26 = vpop.permute.xlu1 %542 }
 0x709   :  { %1727 = vmatmul.msk.bf16.vlgmr.msrb.gmra.mxu0 %vm272_vm1, %v543_v26 }
 0x786   :  { %v556_v27 = vpop.f32.mrf.mxu0 }
 0x787   :  { %v582_v28 = vadd.f32 %v556_v27, %v2354_v46  ;;  %v562_v31 = vadd.f32 %v561_v30, %v556_v27 }
 0x789   :  { %584 = vrot.lane.b32.xlu2 %v582_v28, %s2175_s22  ;;  %v1728_v32 = vmul.f32 -1.442695, %v562_v31 }
 0x78b   :  { %1831 = vpow2.f32 %v1728_v32  ;;  %v697_v32 = vld [vmem:[#allocation2 + $0xa] sm:$0x3] }
 0x78e   :  { %v558_v29 = vpop.f32.mrf.mxu0 }
 0x791   :  { %v1832_v33 = vpop.eup %1831 }
 0x792   :  { %v566_v34 = vadd.f32 1.0, %v1832_v33 }
 0x794   :  { %1833 = vrcp.f32 %v566_v34  ;;  %v578_v40 = vand.u32 2147483648, %v566_v34  ;;  %vm572_vm3 = vweird.f32 %v566_v34  ;;  %v576_v41 = vand.u32 2147483647, %v566_v34 }
 0x796   :  { %v579_v43 = vor.u32 1.1754944e-38, %v578_v40  ;;  %vm577_vm5 = vcmp.eq.f32.partialorder %v576_v41, 8.507059e+37 }
 0x79a   :  { %v1834_v35 = vpop.eup %1833 }
 0x79b   :  { %v568_v36 = vmul.f32 %v1834_v35, %v566_v34  ;;  %vm573_vm15 = vweird.f32 %v1834_v35 }
 0x79c   :  { %vm574_vm4 = vmor %vm572_vm3, %vm573_vm15 }
 0x79d   :  { %v569_v37 = vsub.f32 1.0, %v568_v36 }
 0x79f   :  { %v570_v38 = vmul.f32 %v1834_v35, %v569_v37 }
 0x7a1   :  { %v571_v39 = vadd.f32 %v1834_v35, %v570_v38 }
 0x7a3   :  { %v575_v42 = vsel %vm574_vm4, %v1834_v35, %v571_v39 }
 0x7a4   :  { %v580_v45 = vsel %vm577_vm5, %v579_v43, %v575_v42 }
 0x7a5   :  { %v594_v51 = vsub.f32 1.0, %v580_v45  ;;  %v600_v53 = vmul.f32 %v580_v45, %v2393_v23 }
 0x7e3   :  { %v585_v44 = vpop.permute.xlu2 %584 }
 0x7e4   :  { %v587_v47 = vmul.f32 %v585_v44, %v580_v45 }
 0x7e6   :  { %589 = vrot.lane.b32.xlu0 %v587_v47, %s2175_s22 }
 0x858   :  { %v590_v48 = vpop.permute.xlu0 %589 }
 0x859   :  { %v592_v49 = vadd.f32 %v590_v48, %v561_v30 }
 0x85b   :  { %1835 = vtanh.f32 %v592_v49 }
 0x861   :  { %v1836_v50 = vpop.eup %1835 }
 0x862   :  { %596 = vrot.lane.b32.xlu1 %v1836_v50, %s2187_s4 }
 0x8d4   :  { %v597_v52 = vpop.permute.xlu1 %596 }
 0x8d5   :  { %v599_v54 = vmul.f32 %v597_v52, %v594_v51 }
 0x8d7   :  { %v2404_v56 = vadd.f32 %v600_v53, %v599_v54 }
 0x8d9   :  { %v608_v57 = vpack.c.bf16 %v2404_v56, %v2404_v56 }
 0x8db   :  { %610 = vrot.lane.b32.xlu2 %v608_v57, %s2187_s4 }
 0x935   :  { %v611_v58 = vpop.permute.xlu2 %610 }
 0x936   :  { %1729 = vmatmul.msk.bf16.vlgmr.msrb.gmra.mxu1 %vm272_vm1, %v611_v58 }
 0x9b3   :  { %v624_v59 = vpop.f32.mrf.mxu1 }
 0x9b4   :  { %v650_v60 = vadd.f32 %v624_v59, %v2354_v46  ;;  %v630_v63 = vadd.f32 %v629_v62, %v624_v59 }
 0x9b6   :  { %652 = vrot.lane.b32.xlu0 %v650_v60, %s2175_s22  ;;  %v1730_v0 = vmul.f32 -1.442695, %v630_v63 }
 0x9b8   :  { %1837 = vpow2.f32 %v1730_v0 }
 0x9bb   :  { %v626_v61 = vpop.f32.mrf.mxu1 }
 0x9be   :  { %v1838_v1 = vpop.eup %1837 }
 0x9bf   :  { %v634_v3 = vadd.f32 1.0, %v1838_v1  ;;  %v765_v1 = vld [vmem:[#allocation2 + $0xc] sm:$0x3] }
 0x9c1   :  { %1839 = vrcp.f32 %v634_v3  ;;  %v646_v9 = vand.u32 2147483648, %v634_v3  ;;  %vm640_vm7 = vweird.f32 %v634_v3  ;;  %v644_v10 = vand.u32 2147483647, %v634_v3 }
 0x9c3   :  { %v647_v12 = vor.u32 1.1754944e-38, %v646_v9  ;;  %vm645_vm9 = vcmp.eq.f32.partialorder %v644_v10, 8.507059e+37 }
 0x9c7   :  { %v1840_v4 = vpop.eup %1839 }
 0x9c8   :  { %v636_v5 = vmul.f32 %v1840_v4, %v634_v3  ;;  %vm641_vm6 = vweird.f32 %v1840_v4 }
 0x9c9   :  { %vm642_vm8 = vmor %vm640_vm7, %vm641_vm6 }
 0x9ca   :  { %v637_v6 = vsub.f32 1.0, %v636_v5 }
 0x9cc   :  { %v638_v7 = vmul.f32 %v1840_v4, %v637_v6 }
 0x9ce   :  { %v639_v8 = vadd.f32 %v1840_v4, %v638_v7 }
 0x9d0   :  { %v643_v11 = vsel %vm642_vm8, %v1840_v4, %v639_v8 }
 0x9d1   :  { %v648_v14 = vsel %vm645_vm9, %v647_v12, %v643_v11  ;;  %vm402_vm9 = vcmask 254976  }
 0x9d2   :  { %v662_v20 = vsub.f32 1.0, %v648_v14  ;;  %v668_v22 = vmul.f32 %v648_v14, %v2404_v56 }
 0xa28   :  { %v653_v13 = vpop.permute.xlu0 %652 }
 0xa29   :  { %v655_v15 = vmul.f32 %v653_v13, %v648_v14 }
 0xa2b   :  { %657 = vrot.lane.b32.xlu1 %v655_v15, %s2175_s22 }
 0xa9d   :  { %v658_v16 = vpop.permute.xlu1 %657 }
 0xa9e   :  { %v660_v17 = vadd.f32 %v658_v16, %v629_v62 }
 0xaa0   :  { %1841 = vtanh.f32 %v660_v17 }
 0xaa6   :  { %v1842_v19 = vpop.eup %1841 }
 0xaa7   :  { %664 = vrot.lane.b32.xlu2 %v1842_v19, %s2187_s4 }
 0xb01   :  { %v665_v21 = vpop.permute.xlu2 %664 }
 0xb02   :  { %v667_v25 = vmul.f32 %v665_v21, %v662_v20 }
 0xb04   :  { %v2415_v26 = vadd.f32 %v668_v22, %v667_v25 }
 0xb06   :  { %v676_v27 = vpack.c.bf16 %v2415_v26, %v2415_v26 }
 0xb08   :  { %678 = vrot.lane.b32.xlu0 %v676_v27, %s2187_s4 }
 0xb7a   :  { %v679_v28 = vpop.permute.xlu0 %678 }
 0xb7b   :  { %1731 = vmatmul.msk.bf16.vlgmr.msrb.gmra.mxu2 %vm272_vm1, %v679_v28 }
 0xbfe   :  { %v692_v29 = vpop.f32.mrf.mxu2 }
 0xbff   :  { %v718_v30 = vadd.f32 %v692_v29, %v2354_v46  ;;  %v698_v33 = vadd.f32 %v697_v32, %v692_v29 }
 0xc01   :  { %720 = vrot.lane.b32.xlu1 %v718_v30, %s2175_s22  ;;  %v1732_v34 = vmul.f32 -1.442695, %v698_v33 }
 0xc03   :  { %1843 = vpow2.f32 %v1732_v34 }
 0xc06   :  { %v694_v31 = vpop.f32.mrf.mxu2 }
 0xc09   :  { %v1844_v35 = vpop.eup %1843 }
 0xc0a   :  { %v702_v36 = vadd.f32 1.0, %v1844_v35 }
 0xc0c   :  { %1845 = vrcp.f32 %v702_v36  ;;  %v714_v42 = vand.u32 2147483648, %v702_v36  ;;  %vm708_vm11 = vweird.f32 %v702_v36  ;;  %v712_v43 = vand.u32 2147483647, %v702_v36 }
 0xc0e   :  { %v715_v45 = vor.u32 1.1754944e-38, %v714_v42  ;;  %vm713_vm13 = vcmp.eq.f32.partialorder %v712_v43, 8.507059e+37 }
 0xc12   :  { %v1846_v37 = vpop.eup %1845 }
 0xc13   :  { %v704_v38 = vmul.f32 %v1846_v37, %v702_v36  ;;  %vm709_vm10 = vweird.f32 %v1846_v37  ;;  %v833_v36 = vld [vmem:[#allocation2 + $0xe] sm:$0x3] }
 0xc14   :  { %vm710_vm12 = vmor %vm708_vm11, %vm709_vm10 }
 0xc15   :  { %v705_v39 = vsub.f32 1.0, %v704_v38 }
 0xc17   :  { %v706_v40 = vmul.f32 %v1846_v37, %v705_v39 }
 0xc19   :  { %v707_v41 = vadd.f32 %v1846_v37, %v706_v40 }
 0xc1b   :  { %v711_v44 = vsel %vm710_vm12, %v1846_v37, %v707_v41 }
 0xc1c   :  { %v716_v48 = vsel %vm713_vm13, %v715_v45, %v711_v44 }
 0xc1d   :  { %v730_v53 = vsub.f32 1.0, %v716_v48  ;;  %v736_v57 = vmul.f32 %v716_v48, %v2415_v26 }
 0xc73   :  { %v721_v47 = vpop.permute.xlu1 %720 }
 0xc74   :  { %v723_v49 = vmul.f32 %v721_v47, %v716_v48 }
 0xc76   :  { %725 = vrot.lane.b32.xlu2 %v723_v49, %s2175_s22 }
 0xcd0   :  { %v726_v50 = vpop.permute.xlu2 %725 }
 0xcd1   :  { %v728_v51 = vadd.f32 %v726_v50, %v697_v32 }
 0xcd3   :  { %1847 = vtanh.f32 %v728_v51 }
 0xcd9   :  { %v1848_v52 = vpop.eup %1847 }
 0xcda   :  { %732 = vrot.lane.b32.xlu0 %v1848_v52, %s2187_s4 }
 0xd4c   :  { %v733_v54 = vpop.permute.xlu0 %732 }
 0xd4d   :  { %v735_v58 = vmul.f32 %v733_v54, %v730_v53 }
 0xd4f   :  { %v2426_v59 = vadd.f32 %v736_v57, %v735_v58 }
 0xd51   :  { %v744_v60 = vpack.c.bf16 %v2426_v59, %v2426_v59 }
 0xd53   :  { %746 = vrot.lane.b32.xlu1 %v744_v60, %s2187_s4 }
 0xdc5   :  { %v747_v61 = vpop.permute.xlu1 %746 }
 0xdc6   :  { %1733 = vmatmul.msk.bf16.vlgmr.msrb.gmra.mxu3 %vm272_vm1, %v747_v61 }
 0xe49   :  { %v760_v62 = vpop.f32.mrf.mxu3 }
 0xe4a   :  { %v786_v63 = vadd.f32 %v760_v62, %v2354_v46  ;;  %v766_v3 = vadd.f32 %v765_v1, %v760_v62 }
 0xe4c   :  { %788 = vrot.lane.b32.xlu2 %v786_v63, %s2175_s22  ;;  %v1734_v4 = vmul.f32 -1.442695, %v766_v3  ;;  %v1810_v3 = vld [vmem:[%s2627_s9] ss:$0 sm:$0xff] }
 0xe4e   :  { %1849 = vpow2.f32 %v1734_v4  ;;  %v1785_v4 = vld [vmem:[#allocation13] sm:$0xff] }
 0xe51   :  { %v762_v0 = vpop.f32.mrf.mxu3 }
 0xe54   :  { %v1850_v5 = vpop.eup %1849 }
 0xe55   :  { %v770_v6 = vadd.f32 1.0, %v1850_v5  ;;  %v982_v5 = vld [vmem:[#allocation7 + $0x2] sm:$0x3] }
 0xe57   :  { %1851 = vrcp.f32 %v770_v6  ;;  %v782_v12 = vand.u32 2147483648, %v770_v6  ;;  %vm776_vm15 = vweird.f32 %v770_v6  ;;  %v780_v13 = vand.u32 2147483647, %v770_v6 }
 0xe59   :  { %v783_v15 = vor.u32 1.1754944e-38, %v782_v12  ;;  %vm781_vm4 = vcmp.eq.f32.partialorder %v780_v13, 8.507059e+37 }
 0xe5d   :  { %v1852_v7 = vpop.eup %1851 }
 0xe5e   :  { %v772_v8 = vmul.f32 %v1852_v7, %v770_v6  ;;  %vm777_vm14 = vweird.f32 %v1852_v7 }
 0xe5f   :  { %vm778_vm3 = vmor %vm776_vm15, %vm777_vm14 }
 0xe60   :  { %v773_v9 = vsub.f32 1.0, %v772_v8 }
 0xe62   :  { %v774_v10 = vmul.f32 %v1852_v7, %v773_v9 }
 0xe64   :  { %v775_v11 = vadd.f32 %v1852_v7, %v774_v10 }
 0xe66   :  { %v779_v14 = vsel %vm778_vm3, %v1852_v7, %v775_v11  ;;  %v983_v7 = vpack.c.bf16 %v982_v5, %v982_v5 }
 0xe67   :  { %v784_v17 = vsel %vm781_vm4, %v783_v15, %v779_v14  ;;  %v1784_v14 = vld [vmem:[#allocation12 + $0x8] sm:$0xff]  ;;  %v1783_v15 = vld [vmem:[#allocation12] sm:$0xff] }
 0xe68   :  { %v798_v25 = vsub.f32 1.0, %v784_v17  ;;  %v804_v28 = vmul.f32 %v784_v17, %v2426_v59  ;;  %946 = vmatpush.bf16.msra.mxu1 %v1784_v14 }
 0xe6c   :  { %947 = vmatpush.bf16.msra.mxu1 %v1783_v15 }
 0xea6   :  { %v789_v16 = vpop.permute.xlu2 %788 }
 0xea7   :  { %v791_v19 = vmul.f32 %v789_v16, %v784_v17 }
 0xea9   :  { %793 = vrot.lane.b32.xlu0 %v791_v19, %s2175_s22 }
 0xf1b   :  { %v794_v20 = vpop.permute.xlu0 %793 }
 0xf1c   :  { %v796_v21 = vadd.f32 %v794_v20, %v765_v1  ;;  %v1786_v1 = vld [vmem:[#allocation13 + $0x8] sm:$0xff] }
 0xf1d   :  { %1005 = vmatpush.bf16.msra.mxu2 %v1786_v1  ;;  %1080 = vmatpush.bf16.msra.mxu3 %v1786_v1 }
 0xf1e   :  { %1853 = vtanh.f32 %v796_v21  ;;  %1146 = vmatpush.bf16.msrb.mxu0 %v1786_v1  ;;  %1212 = vmatpush.bf16.msrb.mxu1 %v1786_v1 }
 0xf21   :  { %1006 = vmatpush.bf16.msra.mxu2 %v1785_v4  ;;  %1081 = vmatpush.bf16.msra.mxu3 %v1785_v4 }
 0xf22   :  { %1147 = vmatpush.bf16.msrb.mxu0 %v1785_v4  ;;  %1213 = vmatpush.bf16.msrb.mxu1 %v1785_v4 }
 0xf24   :  { %v1854_v22 = vpop.eup %1853  ;;  %1754 = vmatmul.msk.bf16.vlgmr.msra.gmra.mxu2 %vm272_vm1, %v983_v7 }
 0xf25   :  { %800 = vrot.lane.b32.xlu1 %v1854_v22, %s2187_s4  ;;  %1278 = vmatpush.bf16.msrb.mxu2 %v1786_v1 }
 0xf26   :  { %1344 = vmatpush.bf16.msrb.mxu3 %v1786_v1 }
 0xf29   :  { %1279 = vmatpush.bf16.msrb.mxu2 %v1785_v4 }
 0xf2a   :  { %1345 = vmatpush.bf16.msrb.mxu3 %v1785_v4 }
 0xf97   :  { %v801_v27 = vpop.permute.xlu1 %800 }
 0xf98   :  { %v803_v29 = vmul.f32 %v801_v27, %v798_v25 }
 0xf9a   :  { %v2437_v30 = vadd.f32 %v804_v28, %v803_v29  ;;  %v1811_v29 = vld [vmem:[%s2626_s8] ss:$0 sm:$0xff]  ;;  %s2188_s8 = smov [#allocation19]  }
 0xf9c   :  { %v812_v31 = vpack.c.bf16 %v2437_v30, %v2437_v30 }
 0xf9e   :  { %814 = vrot.lane.b32.xlu2 %v812_v31, %s2187_s4 }
 0xfa7   :  { %v1008_v20 = vpop.f32.mrf.mxu2 }
 0xfaf   :  { %v1010_v28 = vpop.f32.mrf.mxu2 }
 0xff8   :  { %v815_v32 = vpop.permute.xlu2 %814 }
 0xff9   :  { %1735 = vmatmul.msk.bf16.vlgmr.msra.gmra.mxu0 %vm272_vm1, %v815_v32 }
 0xffa   :  { %1410 = vmatpush.bf16.msra.mxu0 %v1786_v1 }
 0xffe   :  { %1411 = vmatpush.bf16.msra.mxu0 %v1785_v4 }
0x1076   :  { %v828_v33 = vpop.f32.mrf.mxu0 }
0x1077   :  { %v854_v34 = vadd.f32 %v828_v33, %v2354_v46  ;;  %v834_v37 = vadd.f32 %v833_v36, %v828_v33 }
0x1079   :  { %856 = vrot.lane.b32.xlu0 %v854_v34, %s2175_s22  ;;  %v1736_v38 = vmul.f32 -1.442695, %v834_v37 }
0x107b   :  { %1855 = vpow2.f32 %v1736_v38 }
0x107e   :  { %v830_v35 = vpop.f32.mrf.mxu0 }
0x1081   :  { %399 = vrot.lane.b32.xlu0 %v2371_v24, %s2187_s4  ;;  %v1856_v39 = vpop.eup %1855 }
0x1082   :  { %v838_v40 = vadd.f32 1.0, %v1856_v39 }
0x1084   :  { %1857 = vrcp.f32 %v838_v40  ;;  %v850_v24 = vand.u32 2147483648, %v838_v40  ;;  %vm844_vm6 = vweird.f32 %v838_v40  ;;  %v848_v45 = vand.u32 2147483647, %v838_v40 }
0x1086   :  { %v851_v47 = vor.u32 1.1754944e-38, %v850_v24  ;;  %vm849_vm8 = vcmp.eq.f32.partialorder %v848_v45, 8.507059e+37 }
0x1089   :  { %603 = vrot.lane.b32.xlu0 %v2404_v56, %s2187_s4 }
0x108a   :  { %v1858_v46 = vpop.eup %1857 }
0x108b   :  { %v840_v41 = vmul.f32 %v1858_v46, %v838_v40  ;;  %vm845_vm5 = vweird.f32 %v1858_v46 }
0x108c   :  { %vm846_vm7 = vmor %vm844_vm6, %vm845_vm5 }
0x108d   :  { %v841_v42 = vsub.f32 1.0, %v840_v41 }
0x108f   :  { %v842_v43 = vmul.f32 %v1858_v46, %v841_v42 }
0x1091   :  { %807 = vrot.lane.b32.xlu0 %v2437_v30, %s2187_s4  ;;  %v843_v44 = vadd.f32 %v1858_v46, %v842_v43 }
0x1093   :  { %v847_v56 = vsel %vm846_vm7, %v1858_v46, %v843_v44 }
0x1094   :  { %v852_v49 = vsel %vm849_vm8, %v851_v47, %v847_v56 }
0x1095   :  { %v866_v6 = vsub.f32 1.0, %v852_v49  ;;  %v872_v8 = vmul.f32 %v852_v49, %v2437_v30 }
0x10eb   :  { %v857_v48 = vpop.permute.xlu0 %856 }
0x10ec   :  { %v859_v50 = vmul.f32 %v857_v48, %v852_v49 }
0x10ee   :  { %861 = vrot.lane.b32.xlu1 %v859_v50, %s2175_s22 }
0x10f3   :  { %v400_v51 = vpop.permute.xlu0 %399 }
0x10f4   :  { %403 = vst.msk [vmem:[#allocation3] sm:$0x3] %vm402_vm9, %v400_v51 }
0x10f6   :  { %467 = vrot.lane.b32.xlu1 %v2382_v55, %s2187_s4 }
0x10fb   :  { %v881_v52 = vld [vmem:[#allocation3] sm:$0x3]  ;;  %v604_v53 = vpop.permute.xlu0 %603 }
0x10fc   :  { %897 = vst [vmem:[#allocation1] ss:$4 sm:$0xff] %v881_v52 }
0x10fd   :  { %607 = vst.msk [vmem:[#allocation3 + $0x6] sm:$0x3] %vm402_vm9, %v604_v53 }
0x10fe   :  { %671 = vrot.lane.b32.xlu1 %v2415_v26, %s2187_s4 }
0x1103   :  { %v808_v54 = vpop.permute.xlu0 %807 }
0x1104   :  { %v884_v57 = vld [vmem:[#allocation3 + $0x6] sm:$0x3]  ;;  %811 = vst.msk [vmem:[#allocation3 + $0xc] sm:$0x3] %vm402_vm9, %v808_v54 }
0x1105   :  { %903 = vst [vmem:[#allocation1 + $0x3] ss:$4 sm:$0xff] %v884_v57 }
0x110b   :  { %v887_v58 = vld [vmem:[#allocation3 + $0xc] sm:$0x3] }
0x110c   :  { %909 = vst [vmem:[#allocation1 + $0x22] ss:$4 sm:$0xff] %v887_v58 }
0x1160   :  { %v862_v60 = vpop.permute.xlu1 %861 }
0x1161   :  { %v864_v61 = vadd.f32 %v862_v60, %v833_v36 }
0x1163   :  { %1859 = vtanh.f32 %v864_v61 }
0x1168   :  { %v468_v62 = vpop.permute.xlu1 %467 }
0x1169   :  { %v1860_v55 = vpop.eup %1859  ;;  %471 = vst.msk [vmem:[#allocation3 + $0x2] sm:$0x3] %vm402_vm9, %v468_v62 }
0x116a   :  { %868 = vrot.lane.b32.xlu2 %v1860_v55, %s2187_s4 }
0x1170   :  { %v882_v63 = vld [vmem:[#allocation3 + $0x2] sm:$0x3]  ;;  %v672_v0 = vpop.permute.xlu1 %671 }
0x1171   :  { %899 = vst [vmem:[#allocation1 + $0x1] ss:$4 sm:$0xff] %v882_v63 }
0x1172   :  { %675 = vst.msk [vmem:[#allocation3 + $0x8] sm:$0x3] %vm402_vm9, %v672_v0  ;;  %535 = vrot.lane.b32.xlu2 %v2393_v23, %s2187_s4 }
0x1179   :  { %v885_v26 = vld [vmem:[#allocation3 + $0x8] sm:$0x3] }
0x117a   :  { %905 = vst [vmem:[#allocation1 + $0x20] ss:$4 sm:$0xff] %v885_v26  ;;  %739 = vrot.lane.b32.xlu2 %v2426_v59, %s2187_s4 }
0x1182   :  { %1035 = vrot.lane.b32.xlu2 %v1810_v3, %s2175_s22 }
0x11c4   :  { %v869_v23 = vpop.permute.xlu2 %868 }
0x11c5   :  { %v871_v59 = vmul.f32 %v869_v23, %v866_v6 }
0x11c7   :  { %v873_v9 = vadd.f32 %v872_v8, %v871_v59 }
0x11c9   :  { %875 = vrot.lane.b32.xlu1 %v873_v9, %s2187_s4 }
0x11cc   :  { %v536_v10 = vpop.permute.xlu2 %535 }
0x11cd   :  { %539 = vst.msk [vmem:[#allocation3 + $0x4] sm:$0x3] %vm402_vm9, %v536_v10 }
0x11d4   :  { %v883_v11 = vld [vmem:[#allocation3 + $0x4] sm:$0x3]  ;;  %v740_v12 = vpop.permute.xlu2 %739 }
0x11d5   :  { %901 = vst [vmem:[#allocation1 + $0x2] ss:$4 sm:$0xff] %v883_v11 }
0x11d6   :  { %743 = vst.msk [vmem:[#allocation3 + $0xa] sm:$0x3] %vm402_vm9, %v740_v12 }
0x11dc   :  { %v2477_v19 = vpop.permute.xlu2 %1035  ;;  %v912_v21 = vld.sshfl [vmem:[#allocation1] sm:$0xff pattern:$0x73625140] }
0x11dd   :  { %v886_v13 = vld [vmem:[#allocation3 + $0xa] sm:$0x3]  ;;  %v1038_v25 = vadd.f32 %v2477_v19, %v1008_v20 }
0x11de   :  { %907 = vst [vmem:[#allocation1 + $0x21] ss:$4 sm:$0xff] %v886_v13 }
0x11df   :  { %1040 = vrot.lane.b32.xlu0 %v1038_v25, %s2175_s22 }
0x11e7   :  { %1057 = vrot.lane.b32.xlu0 %v982_v5, %s2172_s30 }
0x123b   :  { %v876_v16 = vpop.permute.xlu1 %875 }
0x123c   :  { %879 = vst.msk [vmem:[#allocation3 + $0xe] sm:$0x3] %vm402_vm9, %v876_v16 }
0x123d   :  { %880 = vst.msk [vmem:[#allocation19] sm:$0x3] %vm402_vm9, %v876_v16 }
0x1243   :  { %v888_v17 = vld [vmem:[#allocation3 + $0xe] sm:$0x3] }
0x1244   :  { %911 = vst [vmem:[#allocation1 + $0x23] ss:$4 sm:$0xff] %v888_v17 }
0x124b   :  { %v913_v22 = vld.sshfl [vmem:[#allocation1 + $0x20] sm:$0xff pattern:$0x73625140] }
0x124c   :  { %v916_v27 = vpack.c.bf16 %v913_v22, %v912_v21 }
0x124e   :  { %1745 = vmatmul.msk.bf16.vlgmr.msra.gmra.mxu1 %vm272_vm1, %v916_v27 }
0x124f   :  { %1476 = vmatpush.bf16.msra.mxu1 %v1786_v1 }
0x1251   :  { %v1041_v52 = vpop.permute.xlu0 %1040 }
0x1253   :  { %1477 = vmatpush.bf16.msra.mxu1 %v1785_v4 }
0x1259   :  { %v1058_v61 = vpop.permute.xlu0 %1057 }
0x12cb   :  { %v949_v30 = vpop.f32.mrf.mxu1 }
0x12cc   :  { %v950_v31 = vadd.f32 %v1811_v29, %v949_v30 }
0x12ce   :  { %v956_v32 = vrot.slane %v950_v31, 2  ;;  %v957_v33 = vrot.slane %v950_v31, 4  ;;  %v958_v34 = vrot.slane %v950_v31, 6  ;;  %968 = vst.msk [vmem:[#allocation2] sm:$0x3] %vm304_vm2, %v950_v31 }
0x12d0   :  { %969 = vst.msk [vmem:[#allocation2 + $0x2] sm:$0x3] %vm304_vm2, %v956_v32 }
0x12d1   :  { %970 = vst.msk [vmem:[#allocation2 + $0x4] sm:$0x3] %vm304_vm2, %v957_v33 }
0x12d2   :  { %971 = vst.msk [vmem:[#allocation2 + $0x6] sm:$0x3] %vm304_vm2, %v958_v34 }
0x12d3   :  { %v951_v35 = vpop.f32.mrf.mxu1 }
0x12d4   :  { %v952_v36 = vadd.f32 %v1811_v29, %v951_v35 }
0x12d5   :  { %v1012_v37 = vld [vmem:[#allocation2] sm:$0x3] }
0x12d6   :  { %v959_v38 = vrot.slane %v952_v36, 2  ;;  %v960_v39 = vrot.slane %v952_v36, 4  ;;  %v961_v40 = vrot.slane %v952_v36, 6  ;;  %972 = vst.msk [vmem:[#allocation2 + $0x8] sm:$0x3] %vm304_vm2, %v952_v36  ;;  %v1013_v46 = vadd.f32 %v1012_v37, %v1008_v20 }
0x12d7   :  { %v1087_v7 = vld [vmem:[#allocation2 + $0x2] sm:$0x3] }
0x12d8   :  { %973 = vst.msk [vmem:[#allocation2 + $0xa] sm:$0x3] %vm304_vm2, %v959_v38  ;;  %v1755_v41 = vmul.f32 -1.442695, %v1013_v46 }
0x12d9   :  { %974 = vst.msk [vmem:[#allocation2 + $0xc] sm:$0x3] %vm304_vm2, %v960_v39 }
0x12da   :  { %975 = vst.msk [vmem:[#allocation2 + $0xe] sm:$0x3] %vm304_vm2, %v961_v40  ;;  %1861 = vpow2.f32 %v1755_v41  ;;  %v1153_v40 = vld [vmem:[#allocation2 + $0x4] sm:$0x3] }
0x12e0   :  { %v1862_v42 = vpop.eup %1861 }
0x12e1   :  { %v1017_v43 = vadd.f32 1.0, %v1862_v42 }
0x12e3   :  { %1863 = vrcp.f32 %v1017_v43  ;;  %v1029_v56 = vand.u32 2147483648, %v1017_v43  ;;  %v1027_v48 = vand.u32 2147483647, %v1017_v43  ;;  %vm1023_vm11 = vweird.f32 %v1017_v43 }
0x12e5   :  { %v1030_v50 = vor.u32 1.1754944e-38, %v1029_v56  ;;  %vm1028_vm13 = vcmp.eq.f32.partialorder %v1027_v48, 8.507059e+37 }
0x12e9   :  { %v1864_v44 = vpop.eup %1863 }
0x12ea   :  { %v1019_v24 = vmul.f32 %v1864_v44, %v1017_v43  ;;  %vm1024_vm10 = vweird.f32 %v1864_v44 }
0x12eb   :  { %vm1025_vm12 = vmor %vm1023_vm11, %vm1024_vm10 }
0x12ec   :  { %v1020_v45 = vsub.f32 1.0, %v1019_v24 }
0x12ee   :  { %v1021_v47 = vmul.f32 %v1864_v44, %v1020_v45 }
0x12f0   :  { %v1022_v49 = vadd.f32 %v1864_v44, %v1021_v47 }
0x12f2   :  { %v1026_v51 = vsel %vm1025_vm12, %v1864_v44, %v1022_v49 }
0x12f3   :  { %v1031_v53 = vsel %vm1028_vm13, %v1030_v50, %v1026_v51 }
0x12f4   :  { %v1043_v54 = vmul.f32 %v1041_v52, %v1031_v53  ;;  %v1050_v62 = vsub.f32 1.0, %v1031_v53  ;;  %v1060_v63 = vmul.f32 %v1058_v61, %v1031_v53 }
0x12f6   :  { %1045 = vrot.lane.b32.xlu1 %v1043_v54, %s2175_s22 }
0x1368   :  { %v1046_v57 = vpop.permute.xlu1 %1045 }
0x1369   :  { %v1048_v58 = vadd.f32 %v1046_v57, %v1012_v37 }
0x136b   :  { %1865 = vtanh.f32 %v1048_v58 }
0x1371   :  { %v1866_v60 = vpop.eup %1865 }
0x1372   :  { %1052 = vrot.lane.b32.xlu2 %v1866_v60, %s2187_s4 }
0x13cc   :  { %v1053_v55 = vpop.permute.xlu2 %1052 }
0x13cd   :  { %v1055_v0 = vmul.f32 %v1053_v55, %v1050_v62 }
0x13cf   :  { %v2496_v26 = vadd.f32 %v1060_v63, %v1055_v0 }
0x13d1   :  { %v1067_v1 = vpack.c.bf16 %v2496_v26, %v2496_v26 }
0x13d3   :  { %1069 = vrot.lane.b32.xlu1 %v1067_v1, %s2187_s4 }
0x1445   :  { %v1070_v3 = vpop.permute.xlu1 %1069 }
0x1446   :  { %1756 = vmatmul.msk.bf16.vlgmr.msra.gmra.mxu3 %vm272_vm1, %v1070_v3 }
0x14c9   :  { %v1083_v4 = vpop.f32.mrf.mxu3 }
0x14ca   :  { %v1108_v5 = vadd.f32 %v1083_v4, %v2477_v19  ;;  %v1088_v23 = vadd.f32 %v1087_v7, %v1083_v4 }
0x14cc   :  { %1110 = vrot.lane.b32.xlu2 %v1108_v5, %s2175_s22  ;;  %v1757_v8 = vmul.f32 -1.442695, %v1088_v23 }
0x14ce   :  { %1867 = vpow2.f32 %v1757_v8 }
0x14d1   :  { %v1085_v6 = vpop.f32.mrf.mxu3 }
0x14d4   :  { %v1868_v59 = vpop.eup %1867 }
0x14d5   :  { %v1092_v9 = vadd.f32 1.0, %v1868_v59 }
0x14d7   :  { %1869 = vrcp.f32 %v1092_v9  ;;  %v1104_v15 = vand.u32 2147483648, %v1092_v9  ;;  %vm1098_vm14 = vweird.f32 %v1092_v9  ;;  %v1102_v16 = vand.u32 2147483647, %v1092_v9 }
0x14d9   :  { %v1105_v20 = vor.u32 1.1754944e-38, %v1104_v15  ;;  %vm1103_vm3 = vcmp.eq.f32.partialorder %v1102_v16, 8.507059e+37 }
0x14dd   :  { %v1870_v10 = vpop.eup %1869 }
0x14de   :  { %v1094_v11 = vmul.f32 %v1870_v10, %v1092_v9  ;;  %vm1099_vm2 = vweird.f32 %v1870_v10 }
0x14df   :  { %vm1100_vm15 = vmor %vm1098_vm14, %vm1099_vm2 }
0x14e0   :  { %v1095_v12 = vsub.f32 1.0, %v1094_v11 }
0x14e2   :  { %v1096_v13 = vmul.f32 %v1870_v10, %v1095_v12 }
0x14e4   :  { %v1097_v14 = vadd.f32 %v1870_v10, %v1096_v13 }
0x14e6   :  { %v1101_v17 = vsel %vm1100_vm15, %v1870_v10, %v1097_v14 }
0x14e7   :  { %v1106_v22 = vsel %vm1103_vm3, %v1105_v20, %v1101_v17 }
0x14e8   :  { %v1120_v30 = vsub.f32 1.0, %v1106_v22  ;;  %v1126_v32 = vmul.f32 %v1106_v22, %v2496_v26 }
0x1526   :  { %v1111_v21 = vpop.permute.xlu2 %1110 }
0x1527   :  { %v1113_v25 = vmul.f32 %v1111_v21, %v1106_v22 }
0x1529   :  { %1115 = vrot.lane.b32.xlu0 %v1113_v25, %s2175_s22 }
0x159b   :  { %v1116_v27 = vpop.permute.xlu0 %1115 }
0x159c   :  { %v1118_v28 = vadd.f32 %v1116_v27, %v1087_v7  ;;  %v1219_v7 = vld [vmem:[#allocation2 + $0x6] sm:$0x3] }
0x159e   :  { %1871 = vtanh.f32 %v1118_v28 }
0x15a4   :  { %v1872_v29 = vpop.eup %1871 }
0x15a5   :  { %1122 = vrot.lane.b32.xlu1 %v1872_v29, %s2187_s4 }
0x1617   :  { %v1123_v31 = vpop.permute.xlu1 %1122 }
0x1618   :  { %v1125_v33 = vmul.f32 %v1123_v31, %v1120_v30 }
0x161a   :  { %v2507_v34 = vadd.f32 %v1126_v32, %v1125_v33 }
0x161c   :  { %v1133_v35 = vpack.c.bf16 %v2507_v34, %v2507_v34 }
0x161e   :  { %1135 = vrot.lane.b32.xlu2 %v1133_v35, %s2187_s4 }
0x1678   :  { %v1136_v36 = vpop.permute.xlu2 %1135 }
0x1679   :  { %1758 = vmatmul.msk.bf16.vlgmr.msrb.gmra.mxu0 %vm272_vm1, %v1136_v36 }
0x16f6   :  { %v1149_v37 = vpop.f32.mrf.mxu0 }
0x16f7   :  { %v1174_v38 = vadd.f32 %v1149_v37, %v2477_v19  ;;  %v1154_v46 = vadd.f32 %v1153_v40, %v1149_v37 }
0x16f9   :  { %1176 = vrot.lane.b32.xlu0 %v1174_v38, %s2175_s22  ;;  %v1759_v41 = vmul.f32 -1.442695, %v1154_v46  ;;  %v1285_v46 = vld [vmem:[#allocation2 + $0x8] sm:$0x3] }
0x16fb   :  { %1873 = vpow2.f32 %v1759_v41 }
0x16fe   :  { %v1151_v39 = vpop.f32.mrf.mxu0 }
0x1701   :  { %v1874_v42 = vpop.eup %1873 }
0x1702   :  { %v1158_v43 = vadd.f32 1.0, %v1874_v42 }
0x1704   :  { %1875 = vrcp.f32 %v1158_v43  ;;  %v1170_v48 = vand.u32 2147483648, %v1158_v43  ;;  %vm1164_vm5 = vweird.f32 %v1158_v43  ;;  %v1168_v49 = vand.u32 2147483647, %v1158_v43 }
0x1706   :  { %v1171_v51 = vor.u32 1.1754944e-38, %v1170_v48  ;;  %vm1169_vm7 = vcmp.eq.f32.partialorder %v1168_v49, 8.507059e+37 }
0x170a   :  { %v1876_v44 = vpop.eup %1875 }
0x170b   :  { %v1160_v24 = vmul.f32 %v1876_v44, %v1158_v43  ;;  %vm1165_vm4 = vweird.f32 %v1876_v44 }
0x170c   :  { %vm1166_vm6 = vmor %vm1164_vm5, %vm1165_vm4 }
0x170d   :  { %v1161_v45 = vsub.f32 1.0, %v1160_v24 }
0x170f   :  { %v1162_v56 = vmul.f32 %v1876_v44, %v1161_v45 }
0x1711   :  { %v1163_v47 = vadd.f32 %v1876_v44, %v1162_v56 }
0x1713   :  { %v1167_v50 = vsel %vm1166_vm6, %v1876_v44, %v1163_v47 }
0x1714   :  { %v1172_v53 = vsel %vm1169_vm7, %v1171_v51, %v1167_v50 }
0x1715   :  { %v1186_v61 = vsub.f32 1.0, %v1172_v53  ;;  %v1192_v55 = vmul.f32 %v1172_v53, %v2507_v34 }
0x176b   :  { %v1177_v52 = vpop.permute.xlu0 %1176 }
0x176c   :  { %v1179_v54 = vmul.f32 %v1177_v52, %v1172_v53 }
0x176e   :  { %1181 = vrot.lane.b32.xlu1 %v1179_v54, %s2175_s22 }
0x17e0   :  { %v1182_v57 = vpop.permute.xlu1 %1181 }
0x17e1   :  { %v1184_v58 = vadd.f32 %v1182_v57, %v1153_v40 }
0x17e3   :  { %1877 = vtanh.f32 %v1184_v58 }
0x17e9   :  { %v1878_v60 = vpop.eup %1877 }
0x17ea   :  { %1188 = vrot.lane.b32.xlu2 %v1878_v60, %s2187_s4 }
0x1844   :  { %v1189_v62 = vpop.permute.xlu2 %1188 }
0x1845   :  { %v1191_v63 = vmul.f32 %v1189_v62, %v1186_v61 }
0x1847   :  { %v2518_v0 = vadd.f32 %v1192_v55, %v1191_v63 }
0x1849   :  { %v1199_v1 = vpack.c.bf16 %v2518_v0, %v2518_v0 }
0x184b   :  { %1201 = vrot.lane.b32.xlu0 %v1199_v1, %s2187_s4 }
0x18bd   :  { %v1202_v3 = vpop.permute.xlu0 %1201 }
0x18be   :  { %1760 = vmatmul.msk.bf16.vlgmr.msrb.gmra.mxu1 %vm272_vm1, %v1202_v3 }
0x193b   :  { %v1215_v4 = vpop.f32.mrf.mxu1 }
0x193c   :  { %v1240_v5 = vadd.f32 %v1215_v4, %v2477_v19  ;;  %v1220_v23 = vadd.f32 %v1219_v7, %v1215_v4 }
0x193e   :  { %1242 = vrot.lane.b32.xlu1 %v1240_v5, %s2175_s22  ;;  %v1761_v8 = vmul.f32 -1.442695, %v1220_v23 }
0x1940   :  { %1879 = vpow2.f32 %v1761_v8  ;;  %v1351_v8 = vld [vmem:[#allocation2 + $0xa] sm:$0x3] }
0x1943   :  { %v1217_v6 = vpop.f32.mrf.mxu1 }
0x1946   :  { %v1880_v59 = vpop.eup %1879 }
0x1947   :  { %v1224_v9 = vadd.f32 1.0, %v1880_v59 }
0x1949   :  { %1881 = vrcp.f32 %v1224_v9  ;;  %v1236_v15 = vand.u32 2147483648, %v1224_v9  ;;  %vm1230_vm10 = vweird.f32 %v1224_v9  ;;  %v1234_v16 = vand.u32 2147483647, %v1224_v9 }
0x194b   :  { %v1237_v20 = vor.u32 1.1754944e-38, %v1236_v15  ;;  %vm1235_vm12 = vcmp.eq.f32.partialorder %v1234_v16, 8.507059e+37 }
0x194f   :  { %v1882_v10 = vpop.eup %1881 }
0x1950   :  { %v1226_v11 = vmul.f32 %v1882_v10, %v1224_v9  ;;  %vm1231_vm8 = vweird.f32 %v1882_v10 }
0x1951   :  { %vm1232_vm11 = vmor %vm1230_vm10, %vm1231_vm8 }
0x1952   :  { %v1227_v12 = vsub.f32 1.0, %v1226_v11 }
0x1954   :  { %v1228_v13 = vmul.f32 %v1882_v10, %v1227_v12 }
0x1956   :  { %v1229_v14 = vadd.f32 %v1882_v10, %v1228_v13 }
0x1958   :  { %v1233_v17 = vsel %vm1232_vm11, %v1882_v10, %v1229_v14 }
0x1959   :  { %v1238_v22 = vsel %vm1235_vm12, %v1237_v20, %v1233_v17 }
0x195a   :  { %v1252_v30 = vsub.f32 1.0, %v1238_v22  ;;  %v1258_v32 = vmul.f32 %v1238_v22, %v2518_v0 }
0x19b0   :  { %v1243_v21 = vpop.permute.xlu1 %1242 }
0x19b1   :  { %v1245_v25 = vmul.f32 %v1243_v21, %v1238_v22 }
0x19b3   :  { %1247 = vrot.lane.b32.xlu2 %v1245_v25, %s2175_s22 }
0x1a0d   :  { %v1248_v27 = vpop.permute.xlu2 %1247 }
0x1a0e   :  { %v1250_v28 = vadd.f32 %v1248_v27, %v1219_v7 }
0x1a10   :  { %1883 = vtanh.f32 %v1250_v28 }
0x1a16   :  { %v1884_v29 = vpop.eup %1883 }
0x1a17   :  { %1254 = vrot.lane.b32.xlu0 %v1884_v29, %s2187_s4 }
0x1a89   :  { %v1255_v31 = vpop.permute.xlu0 %1254 }
0x1a8a   :  { %v1257_v33 = vmul.f32 %v1255_v31, %v1252_v30 }
0x1a8c   :  { %v2529_v35 = vadd.f32 %v1258_v32, %v1257_v33 }
0x1a8e   :  { %v1265_v36 = vpack.c.bf16 %v2529_v35, %v2529_v35 }
0x1a90   :  { %1267 = vrot.lane.b32.xlu1 %v1265_v36, %s2187_s4 }
0x1b02   :  { %v1268_v37 = vpop.permute.xlu1 %1267 }
0x1b03   :  { %1762 = vmatmul.msk.bf16.vlgmr.msrb.gmra.mxu2 %vm272_vm1, %v1268_v37 }
0x1b86   :  { %v1281_v38 = vpop.f32.mrf.mxu2 }
0x1b87   :  { %v1306_v39 = vadd.f32 %v1281_v38, %v2477_v19  ;;  %v1286_v41 = vadd.f32 %v1285_v46, %v1281_v38 }
0x1b89   :  { %1308 = vrot.lane.b32.xlu2 %v1306_v39, %s2175_s22  ;;  %v1763_v42 = vmul.f32 -1.442695, %v1286_v41 }
0x1b8b   :  { %1885 = vpow2.f32 %v1763_v42 }
0x1b8e   :  { %v1283_v40 = vpop.f32.mrf.mxu2 }
0x1b91   :  { %v1886_v43 = vpop.eup %1885 }
0x1b92   :  { %v1290_v44 = vadd.f32 1.0, %v1886_v43  ;;  %v1417_v43 = vld [vmem:[#allocation2 + $0xc] sm:$0x3] }
0x1b94   :  { %1887 = vrcp.f32 %v1290_v44  ;;  %v1302_v49 = vand.u32 2147483648, %v1290_v44  ;;  %vm1296_vm2 = vweird.f32 %v1290_v44  ;;  %v1300_v50 = vand.u32 2147483647, %v1290_v44 }
0x1b96   :  { %v1303_v52 = vor.u32 1.1754944e-38, %v1302_v49  ;;  %vm1301_vm15 = vcmp.eq.f32.partialorder %v1300_v50, 8.507059e+37 }
0x1b9a   :  { %v1888_v24 = vpop.eup %1887 }
0x1b9b   :  { %v1292_v45 = vmul.f32 %v1888_v24, %v1290_v44  ;;  %vm1297_vm13 = vweird.f32 %v1888_v24 }
0x1b9c   :  { %vm1298_vm14 = vmor %vm1296_vm2, %vm1297_vm13 }
0x1b9d   :  { %v1293_v56 = vsub.f32 1.0, %v1292_v45 }
0x1b9f   :  { %v1294_v47 = vmul.f32 %v1888_v24, %v1293_v56 }
0x1ba1   :  { %v1295_v48 = vadd.f32 %v1888_v24, %v1294_v47 }
0x1ba3   :  { %v1299_v51 = vsel %vm1298_vm14, %v1888_v24, %v1295_v48 }
0x1ba4   :  { %v1304_v54 = vsel %vm1301_vm15, %v1303_v52, %v1299_v51 }
0x1ba5   :  { %v1318_v62 = vsub.f32 1.0, %v1304_v54  ;;  %v1324_v63 = vmul.f32 %v1304_v54, %v2529_v35 }
0x1be3   :  { %v1309_v53 = vpop.permute.xlu2 %1308 }
0x1be4   :  { %v1311_v57 = vmul.f32 %v1309_v53, %v1304_v54 }
0x1be6   :  { %1313 = vrot.lane.b32.xlu0 %v1311_v57, %s2175_s22 }
0x1c58   :  { %v1314_v58 = vpop.permute.xlu0 %1313 }
0x1c59   :  { %v1316_v60 = vadd.f32 %v1314_v58, %v1285_v46 }
0x1c5b   :  { %1889 = vtanh.f32 %v1316_v60 }
0x1c61   :  { %v1890_v61 = vpop.eup %1889 }
0x1c62   :  { %1320 = vrot.lane.b32.xlu1 %v1890_v61, %s2187_s4 }
0x1cd4   :  { %v1321_v55 = vpop.permute.xlu1 %1320 }
0x1cd5   :  { %v1323_v1 = vmul.f32 %v1321_v55, %v1318_v62 }
0x1cd7   :  { %v2540_v3 = vadd.f32 %v1324_v63, %v1323_v1 }
0x1cd9   :  { %v1331_v4 = vpack.c.bf16 %v2540_v3, %v2540_v3 }
0x1cdb   :  { %1333 = vrot.lane.b32.xlu2 %v1331_v4, %s2187_s4 }
0x1d35   :  { %v1334_v5 = vpop.permute.xlu2 %1333 }
0x1d36   :  { %1764 = vmatmul.msk.bf16.vlgmr.msrb.gmra.mxu3 %vm272_vm1, %v1334_v5 }
0x1db9   :  { %v1347_v6 = vpop.f32.mrf.mxu3 }
0x1dba   :  { %v1372_v7 = vadd.f32 %v1347_v6, %v2477_v19  ;;  %v1352_v59 = vadd.f32 %v1351_v8, %v1347_v6 }
0x1dbc   :  { %1374 = vrot.lane.b32.xlu0 %v1372_v7, %s2175_s22  ;;  %v1765_v9 = vmul.f32 -1.442695, %v1352_v59 }
0x1dbe   :  { %1891 = vpow2.f32 %v1765_v9 }
0x1dc1   :  { %v1349_v23 = vpop.f32.mrf.mxu3 }
0x1dc4   :  { %v1892_v10 = vpop.eup %1891 }
0x1dc5   :  { %v1356_v11 = vadd.f32 1.0, %v1892_v10 }
0x1dc7   :  { %1893 = vrcp.f32 %v1356_v11  ;;  %v1368_v17 = vand.u32 2147483648, %v1356_v11  ;;  %vm1362_vm4 = vweird.f32 %v1356_v11  ;;  %v1366_v20 = vand.u32 2147483647, %v1356_v11 }
0x1dc9   :  { %v1369_v22 = vor.u32 1.1754944e-38, %v1368_v17  ;;  %vm1367_vm6 = vcmp.eq.f32.partialorder %v1366_v20, 8.507059e+37 }
0x1dcd   :  { %v1894_v12 = vpop.eup %1893 }
0x1dce   :  { %v1358_v13 = vmul.f32 %v1894_v12, %v1356_v11  ;;  %vm1363_vm3 = vweird.f32 %v1894_v12  ;;  %v1483_v11 = vld [vmem:[#allocation2 + $0xe] sm:$0x3] }
0x1dcf   :  { %vm1364_vm5 = vmor %vm1362_vm4, %vm1363_vm3 }
0x1dd0   :  { %v1359_v14 = vsub.f32 1.0, %v1358_v13 }
0x1dd2   :  { %v1360_v15 = vmul.f32 %v1894_v12, %v1359_v14 }
0x1dd4   :  { %v1361_v16 = vadd.f32 %v1894_v12, %v1360_v15 }
0x1dd6   :  { %v1365_v21 = vsel %vm1364_vm5, %v1894_v12, %v1361_v16 }
0x1dd7   :  { %v1370_v27 = vsel %vm1367_vm6, %v1369_v22, %v1365_v21 }
0x1dd8   :  { %v1384_v32 = vsub.f32 1.0, %v1370_v27  ;;  %v1390_v36 = vmul.f32 %v1370_v27, %v2540_v3 }
0x1e2e   :  { %v1375_v25 = vpop.permute.xlu0 %1374 }
0x1e2f   :  { %v1377_v28 = vmul.f32 %v1375_v25, %v1370_v27 }
0x1e31   :  { %1379 = vrot.lane.b32.xlu1 %v1377_v28, %s2175_s22 }
0x1ea3   :  { %v1380_v29 = vpop.permute.xlu1 %1379 }
0x1ea4   :  { %v1382_v30 = vadd.f32 %v1380_v29, %v1351_v8 }
0x1ea6   :  { %1895 = vtanh.f32 %v1382_v30 }
0x1eac   :  { %v1896_v31 = vpop.eup %1895 }
0x1ead   :  { %1386 = vrot.lane.b32.xlu2 %v1896_v31, %s2187_s4 }
0x1f07   :  { %v1387_v33 = vpop.permute.xlu2 %1386 }
0x1f08   :  { %v1389_v37 = vmul.f32 %v1387_v33, %v1384_v32 }
0x1f0a   :  { %v2551_v38 = vadd.f32 %v1390_v36, %v1389_v37 }
0x1f0c   :  { %v1397_v39 = vpack.c.bf16 %v2551_v38, %v2551_v38 }
0x1f0e   :  { %1399 = vrot.lane.b32.xlu0 %v1397_v39, %s2187_s4 }
0x1f80   :  { %v1400_v40 = vpop.permute.xlu0 %1399 }
0x1f81   :  { %1766 = vmatmul.msk.bf16.vlgmr.msra.gmra.mxu0 %vm272_vm1, %v1400_v40 }
0x1ffe   :  { %v1413_v46 = vpop.f32.mrf.mxu0 }
0x1fff   :  { %v1438_v41 = vadd.f32 %v1413_v46, %v2477_v19  ;;  %v1418_v44 = vadd.f32 %v1417_v43, %v1413_v46 }
0x2001   :  { %1440 = vrot.lane.b32.xlu1 %v1438_v41, %s2175_s22  ;;  %v1767_v24 = vmul.f32 -1.442695, %v1418_v44  ;;  %v1788_v44 = vld [vmem:[#allocation15 + $0x8] sm:$0xff] }
0x2002   :  { %1609 = vmatpush.bf16.msra.mxu2 %v1788_v44 }
0x2003   :  { %1897 = vpow2.f32 %v1767_v24 }
0x2006   :  { %v1415_v42 = vpop.f32.mrf.mxu0 }
0x2009   :  { %v1898_v45 = vpop.eup %1897 }
0x200a   :  { %v1422_v56 = vadd.f32 1.0, %v1898_v45 }
0x200c   :  { %1899 = vrcp.f32 %v1422_v56  ;;  %v1434_v52 = vand.u32 2147483648, %v1422_v56  ;;  %vm1428_vm8 = vweird.f32 %v1422_v56  ;;  %v1432_v53 = vand.u32 2147483647, %v1422_v56 }
0x200e   :  { %v1435_v57 = vor.u32 1.1754944e-38, %v1434_v52  ;;  %vm1433_vm11 = vcmp.eq.f32.partialorder %v1432_v53, 8.507059e+37 }
0x2012   :  { %v1900_v47 = vpop.eup %1899 }
0x2013   :  { %v1424_v48 = vmul.f32 %v1900_v47, %v1422_v56  ;;  %vm1429_vm7 = vweird.f32 %v1900_v47 }
0x2014   :  { %vm1430_vm10 = vmor %vm1428_vm8, %vm1429_vm7 }
0x2015   :  { %v1425_v49 = vsub.f32 1.0, %v1424_v48 }
0x2017   :  { %v1426_v50 = vmul.f32 %v1900_v47, %v1425_v49 }
0x2019   :  { %v1427_v51 = vadd.f32 %v1900_v47, %v1426_v50 }
0x201b   :  { %v1431_v54 = vsel %vm1430_vm10, %v1900_v47, %v1427_v51 }
0x201c   :  { %v1436_v60 = vsel %vm1433_vm11, %v1435_v57, %v1431_v54 }
0x201d   :  { %v1450_v1 = vsub.f32 1.0, %v1436_v60  ;;  %v1456_v5 = vmul.f32 %v1436_v60, %v2551_v38 }
0x2073   :  { %v1441_v58 = vpop.permute.xlu1 %1440 }
0x2074   :  { %v1443_v61 = vmul.f32 %v1441_v58, %v1436_v60 }
0x2076   :  { %1445 = vrot.lane.b32.xlu2 %v1443_v61, %s2175_s22 }
0x20d0   :  { %v1446_v62 = vpop.permute.xlu2 %1445 }
0x20d1   :  { %v1448_v55 = vadd.f32 %v1446_v62, %v1417_v43 }
0x20d3   :  { %1901 = vtanh.f32 %v1448_v55 }
0x20d9   :  { %v1902_v63 = vpop.eup %1901 }
0x20da   :  { %1452 = vrot.lane.b32.xlu0 %v1902_v63, %s2187_s4 }
0x214c   :  { %v1453_v4 = vpop.permute.xlu0 %1452 }
0x214d   :  { %v1455_v6 = vmul.f32 %v1453_v4, %v1450_v1 }
0x214f   :  { %v1457_v7 = vadd.f32 %v1456_v5, %v1455_v6 }
0x2151   :  { %v1463_v23 = vpack.c.bf16 %v1457_v7, %v1457_v7 }
0x2153   :  { %1465 = vrot.lane.b32.xlu1 %v1463_v23, %s2187_s4 }
0x21c5   :  { %v1466_v8 = vpop.permute.xlu1 %1465 }
0x21c6   :  { %1768 = vmatmul.msk.bf16.vlgmr.msra.gmra.mxu1 %vm272_vm1, %v1466_v8 }
0x2243   :  { %v1479_v59 = vpop.f32.mrf.mxu1 }
0x2244   :  { %v1504_v9 = vadd.f32 %v1479_v59, %v2477_v19  ;;  %v1484_v12 = vadd.f32 %v1483_v11, %v1479_v59 }
0x2246   :  { %1506 = vrot.lane.b32.xlu2 %v1504_v9, %s2175_s22  ;;  %v1769_v13 = vmul.f32 -1.442695, %v1484_v12 }
0x2248   :  { %1903 = vpow2.f32 %v1769_v13 }
0x224b   :  { %v1481_v10 = vpop.f32.mrf.mxu1 }
0x224e   :  { %1261 = vrot.lane.b32.xlu2 %v2529_v35, %s2187_s4  ;;  %v1904_v14 = vpop.eup %1903 }
0x224f   :  { %v1488_v15 = vadd.f32 1.0, %v1904_v14 }
0x2251   :  { %1905 = vrcp.f32 %v1488_v15  ;;  %v1500_v35 = vand.u32 2147483648, %v1488_v15  ;;  %vm1494_vm13 = vweird.f32 %v1488_v15  ;;  %v1498_v22 = vand.u32 2147483647, %v1488_v15 }
0x2253   :  { %v1501_v25 = vor.u32 1.1754944e-38, %v1500_v35  ;;  %vm1499_vm14 = vcmp.eq.f32.partialorder %v1498_v22, 8.507059e+37 }
0x2256   :  { %1195 = vrot.lane.b32.xlu2 %v2518_v0, %s2187_s4 }
0x2257   :  { %v1906_v19 = vpop.eup %1905 }
0x2258   :  { %v1490_v16 = vmul.f32 %v1906_v19, %v1488_v15  ;;  %vm1495_vm12 = vweird.f32 %v1906_v19  ;;  %v1812_v15 = vld [vmem:[#allocation16] ss:$0 sm:$0xff] }
0x2259   :  { %vm1496_vm2 = vmor %vm1494_vm13, %vm1495_vm12 }
0x225a   :  { %v1491_v17 = vsub.f32 1.0, %v1490_v16 }
0x225c   :  { %v1492_v20 = vmul.f32 %v1906_v19, %v1491_v17 }
0x225e   :  { %1063 = vrot.lane.b32.xlu2 %v2496_v26, %s2187_s4  ;;  %v1493_v21 = vadd.f32 %v1906_v19, %v1492_v20 }
0x2260   :  { %v1497_v0 = vsel %vm1496_vm2, %v1906_v19, %v1493_v21 }
0x2261   :  { %v1502_v27 = vsel %vm1499_vm14, %v1501_v25, %v1497_v0 }
0x2262   :  { %v1522_v40 = vmul.f32 %v1502_v27, %v1457_v7 }
0x22a0   :  { %v1507_v26 = vpop.permute.xlu2 %1506 }
0x22a1   :  { %v1509_v28 = vmul.f32 %v1507_v26, %v1502_v27 }
0x22a3   :  { %1511 = vrot.lane.b32.xlu0 %v1509_v28, %s2175_s22  ;;  %s1680_s22 = sshll.u32 %s2188_s8, 4  ;;  %s1681_s22 = int_to_ptr.vmem [resolvable:$true] %s1680_s22 }
0x22a8   :  { %v1262_v29 = vpop.permute.xlu2 %1261 }
0x22a9   :  { %1264 = vst.msk [vmem:[#allocation3 + $0x6] sm:$0x3] %vm402_vm9, %v1262_v29 }
0x22ab   :  { %1393 = vrot.lane.b32.xlu0 %v2551_v38, %s2187_s4  ;;  %v1516_v38 = vsub.f32 1.0, %v1502_v27 }
0x22b0   :  { %v1196_v30 = vpop.permute.xlu2 %1195  ;;  %v1534_v45 = vld [vmem:[#allocation3 + $0x6] sm:$0x3] }
0x22b1   :  { %1198 = vst.msk [vmem:[#allocation3 + $0x4] sm:$0x3] %vm402_vm9, %v1196_v30  ;;  %v1545_v47 = vrot.slane %v1534_v45, 4 }
0x22b8   :  { %v1064_v31 = vpop.permute.xlu2 %1063  ;;  %v1533_v49 = vld [vmem:[#allocation3 + $0x4] sm:$0x3] }
0x22b9   :  { %1066 = vst.msk [vmem:[#allocation3] sm:$0x3] %vm402_vm9, %v1064_v31  ;;  %v1539_v53 = vrot.slane %v1533_v49, 4 }
0x2315   :  { %v1512_v32 = vpop.permute.xlu0 %1511 }
0x2316   :  { %v1514_v33 = vadd.f32 %v1512_v32, %v1483_v11 }
0x2318   :  { %1907 = vtanh.f32 %v1514_v33 }
0x231d   :  { %v1394_v36 = vpop.permute.xlu0 %1393 }
0x231e   :  { %v1908_v37 = vpop.eup %1907  ;;  %1396 = vst.msk [vmem:[#allocation3 + $0xa] sm:$0x3] %vm402_vm9, %v1394_v36 }
0x231f   :  { %1518 = vrot.lane.b32.xlu1 %v1908_v37, %s2187_s4 }
0x2325   :  { %v1536_v57 = vld [vmem:[#allocation3 + $0xa] sm:$0x3] }
0x2327   :  { %1129 = vrot.lane.b32.xlu1 %v2507_v34, %s2187_s4  ;;  %v1787_v34 = vld [vmem:[#allocation15] sm:$0xff] }
0x2328   :  { %1610 = vmatpush.bf16.msra.mxu2 %v1787_v34 }
0x232f   :  { %1459 = vrot.lane.b32.xlu1 %v1457_v7, %s2187_s4 }
0x2391   :  { %v1519_v39 = vpop.permute.xlu1 %1518 }
0x2392   :  { %v1521_v46 = vmul.f32 %v1519_v39, %v1516_v38 }
0x2394   :  { %v1523_v41 = vadd.f32 %v1522_v40, %v1521_v46 }
0x2396   :  { %1525 = vrot.lane.b32.xlu0 %v1523_v41, %s2187_s4 }
0x2399   :  { %v1130_v42 = vpop.permute.xlu1 %1129 }
0x239a   :  { %1132 = vst.msk [vmem:[#allocation3 + $0x2] sm:$0x3] %vm402_vm9, %v1130_v42 }
0x239e   :  { %1327 = vrot.lane.b32.xlu0 %v2540_v3, %s2187_s4  ;;  %v1531_v3 = vld [vmem:[#allocation3] sm:$0x3] }
0x239f   :  { %v1540_v58 = vsel %vm172_vm0, %v1539_v53, %v1531_v3 }
0x23a0   :  { %v1544_v55 = vperm.slane %v1540_v58, %v2305_v2 }
0x23a1   :  { %v1460_v43 = vpop.permute.xlu1 %1459  ;;  %v1532_v56 = vld [vmem:[#allocation3 + $0x2] sm:$0x3] }
0x23a2   :  { %1462 = vst.msk [vmem:[#allocation3 + $0xc] sm:$0x3] %vm402_vm9, %v1460_v43  ;;  %v1546_v48 = vsel %vm172_vm0, %v1545_v47, %v1532_v56 }
0x23a3   :  { %v1550_v52 = vperm.slane %v1546_v48, %v2305_v2 }
0x23a5   :  { %v1563_v62 = vrot.slane %v1550_v52, 4 }
0x23a7   :  { %v1564_v5 = vsel %vm172_vm0, %v1563_v62, %v1544_v55 }
0x23a8   :  { %v1568_v8 = vperm.slane %v1564_v5, %v2320_v18 }
0x23a9   :  { %v1537_v61 = vld [vmem:[#allocation3 + $0xc] sm:$0x3] }
0x23aa   :  { %v1551_v1 = vrot.slane %v1537_v61, 4  ;;  %v1577_v11 = vrot.slane %v1568_v8, 4 }
0x2408   :  { %v1526_v24 = vpop.permute.xlu0 %1525 }
0x2409   :  { %1528 = vst.msk [vmem:[#allocation3 + $0xe] sm:$0x3] %vm402_vm9, %v1526_v24 }
0x240a   :  { %1530 = vst.msk [vmem:[#allocation19 + $0x2] sm:$0x3] %vm402_vm9, %v1526_v24 }
0x240b   :  { %1688 = dma.vmem_to_hbm [thread:$0]  %s1681_s22, 64, %s1683_s24, [#allocation20], %s2172_s30, %s2172_s30, %s2173_s14  }
0x240c   :  { %s1667_s30 = sshll.u32 %s2189_s13, 4  ;;  %s1668_s30 = int_to_ptr.vmem [resolvable:$true] %s1667_s30 }
0x2410   :  { %v1328_v50 = vpop.permute.xlu0 %1327  ;;  %v1538_v51 = vld [vmem:[#allocation3 + $0xe] sm:$0x3] }
0x2411   :  { %1330 = vst.msk [vmem:[#allocation3 + $0x8] sm:$0x3] %vm402_vm9, %v1328_v50  ;;  %v1557_v54 = vrot.slane %v1538_v51, 4 }
0x2413   :  { %v1558_v60 = vsel %vm172_vm0, %v1557_v54, %v1536_v57 }
0x2414   :  { %v1562_v63 = vperm.slane %v1558_v60, %v2305_v2 }
0x2416   :  { %v1569_v23 = vrot.slane %v1562_v63, 4 }
0x2418   :  { %v1535_v4 = vld [vmem:[#allocation3 + $0x8] sm:$0x3] }
0x2419   :  { %v1552_v6 = vsel %vm172_vm0, %v1551_v1, %v1535_v4 }
0x241a   :  { %v1556_v7 = vperm.slane %v1552_v6, %v2305_v2 }
0x241c   :  { %v1570_v59 = vsel %vm172_vm0, %v1569_v23, %v1556_v7 }
0x241d   :  { %v1574_v9 = vperm.slane %v1570_v59, %v2320_v18 }
0x241f   :  { %v1575_v10 = vrot.slane %v1574_v9, 4  ;;  %v1578_v13 = vsel %vm172_vm0, %v1574_v9, %v1577_v11 }
0x2421   :  { %v1576_v12 = vsel %vm172_vm0, %v1575_v10, %v1568_v8 }
0x2422   :  { %v1579_v14 = vpack.c.bf16 %v1578_v13, %v1576_v12 }
0x2424   :  { %1778 = vmatmul.msk.bf16.vlgmr.msra.gmra.mxu2 %vm272_vm1, %v1579_v14 }
0x24a7   :  { %v1612_v19 = vpop.f32.mrf.mxu2 }
0x24a8   :  { %v1613_v16 = vadd.f32 %v1812_v15, %v1612_v19 }
0x24aa   :  { %1617 = vmax.xlane.f32.xlu1 %v1613_v16 }
0x24af   :  { %v1614_v2 = vpop.f32.mrf.mxu2 }
0x24b0   :  { %v1615_v17 = vadd.f32 %v1812_v15, %v1614_v2 }
0x24b2   :  { %1619 = vmax.xlane.f32.xlu2 %v1615_v17 }
0x251d   :  { %v1618_v20 = vpop.xlane.xlu1 %1617 }
0x251e   :  { %v1621_v21 = vsub.f32 %v1613_v16, %v1618_v20 }
0x2520   :  { %v1623_v35 = vmul.f32 1.442695, %v1621_v21 }
0x2522   :  { %1909 = vpow2.f32 %v1623_v35 }
0x2525   :  { %v1620_v18 = vpop.xlane.xlu2 %1619 }
0x2526   :  { %v1622_v22 = vsub.f32 %v1615_v17, %v1620_v18 }
0x2528   :  { %v1910_v0 = vpop.eup %1909  ;;  %v1625_v25 = vmul.f32 1.442695, %v1622_v22 }
0x2529   :  { %1627 = vadd.xlane.f32.xlu0 %v1910_v0 }
0x252a   :  { %1911 = vpow2.f32 %v1625_v25 }
0x2530   :  { %v1912_v26 = vpop.eup %1911 }
0x2531   :  { %1629 = vadd.xlane.f32.xlu2 %v1912_v26 }
0x259c   :  { %v1628_v27 = vpop.xlane.xlu0 %1627 }
0x259d   :  { %1913 = vrcp.f32 %v1628_v27  ;;  %v1642_v32 = vand.u32 2147483648, %v1628_v27  ;;  %v1640_v36 = vand.u32 2147483647, %v1628_v27  ;;  %vm1636_vm1 = vweird.f32 %v1628_v27 }
0x259f   :  { %v1643_v39 = vor.u32 1.1754944e-38, %v1642_v32  ;;  %vm1641_vm15 = vcmp.eq.f32.partialorder %v1640_v36, 8.507059e+37 }
0x25a3   :  { %v1914_v28 = vpop.eup %1913 }
0x25a4   :  { %v1632_v29 = vmul.f32 %v1914_v28, %v1628_v27  ;;  %v1630_v30 = vpop.xlane.xlu2 %1629  ;;  %vm1637_vm0 = vweird.f32 %v1914_v28 }
0x25a5   :  { %1915 = vrcp.f32 %v1630_v30  ;;  %vm1638_vm9 = vmor %vm1636_vm1, %vm1637_vm0  ;;  %v1657_v44 = vand.u32 2147483648, %v1630_v30  ;;  %v1655_v24 = vand.u32 2147483647, %v1630_v30  ;;  %vm1651_vm4 = vweird.f32 %v1630_v30 }
0x25a6   :  { %v1633_v31 = vsub.f32 1.0, %v1632_v29 }
0x25a7   :  { %v1658_v56 = vor.u32 1.1754944e-38, %v1657_v44  ;;  %vm1656_vm6 = vcmp.eq.f32.partialorder %v1655_v24, 8.507059e+37 }
0x25a8   :  { %v1634_v33 = vmul.f32 %v1914_v28, %v1633_v31 }
0x25aa   :  { %v1635_v37 = vadd.f32 %v1914_v28, %v1634_v33 }
0x25ab   :  { %v1916_v38 = vpop.eup %1915 }
0x25ac   :  { %v1639_v40 = vsel %vm1638_vm9, %v1914_v28, %v1635_v37  ;;  %v1647_v46 = vmul.f32 %v1916_v38, %v1630_v30  ;;  %vm1652_vm3 = vweird.f32 %v1916_v38 }
0x25ad   :  { %v1644_v41 = vsel %vm1641_vm15, %v1643_v39, %v1639_v40  ;;  %vm1653_vm5 = vmor %vm1651_vm4, %vm1652_vm3 }
0x25ae   :  { %v1648_v42 = vsub.f32 1.0, %v1647_v46  ;;  %v1645_v43 = vmul.f32 %v1910_v0, %v1644_v41 }
0x25b0   :  { %v1649_v34 = vmul.f32 %v1916_v38, %v1648_v42  ;;  %1661 = vst [vmem:[#allocation18] sm:$0xff] %v1645_v43 }
0x25b2   :  { %v1650_v45 = vadd.f32 %v1916_v38, %v1649_v34 }
0x25b4   :  { %v1654_v47 = vsel %vm1653_vm5, %v1916_v38, %v1650_v45 }
0x25b5   :  { %v1659_v48 = vsel %vm1656_vm6, %v1658_v56, %v1654_v47 }
0x25b6   :  { %v1660_v49 = vmul.f32 %v1912_v26, %v1659_v48 }
0x25b8   :  { %1662 = vst [vmem:[#allocation18 + $0x8] sm:$0xff] %v1660_v49 }
0x25b9   :  { %1675 = dma.vmem_to_hbm [thread:$0]  %s1668_s30, 256, %s1670_s26, [#allocation6], %s2179_s29, %s2179_s29, %s2180_s15  }
0x25ba   :  { %2167 = dma.done.wait [#allocation6], 256  }
0x25bb   :  { %2168 = vsyncadd [#allocation6], 4294967040 }
0x25bc   :  { %2169 = dma.done.wait [#allocation20], 64  }
0x25bd   :  { %2170 = vsyncadd [#allocation20], 4294967232 }
0x25be   :  { %1697 = vsyncpa [#allocation5], 1 }
0x25bf   :  { %1698 = vsyncpa [#allocation8], 1 }
0x25c0   :  { %1699 = vsyncpa [#allocation11], 1 }
0x25c1   :  { %1700 = vsyncpa [#allocation14], 1 }
0x25c2   :  { %1701 = vsyncpa [#allocation17], 1 }
0x25c3   :  { %1702 = vsyncpa [#allocation6], 1 }
0x25c4   :  { %1703 = vsyncpa [#allocation20], 1 }

</bundles_post_ra>
